<compile_context>
chip_gen: v7x
topology: tpu7x:2x2x1
jax: 0.10.0
libtpu: 0.0.40
codegen_flags: <defaults>
</compile_context>

<pallas_src>
import functools
import math

import jax
import jax.numpy as jnp
from jax import lax
from jax.experimental import pallas as pl
from jax.experimental.pallas import tpu as pltpu


def _self_output_kernel(x_ref, res_ref, w_ref, b_ref, gamma_ref, beta_ref,
                        o_ref, *, eps):
    # dense: (tm, H) @ (H, H), f32 accumulation on the MXU
    h = jnp.dot(x_ref[...], w_ref[...], preferred_element_type=jnp.float32)
    # bias + residual add in f32
    h = h + b_ref[...] + res_ref[...].astype(jnp.float32)
    # TODO(synk): training-mode dropout not implemented (eval path: identity).
    # LayerNorm over last dim in f32 (biased variance, like torch.nn.LayerNorm)
    mean = jnp.mean(h, axis=-1, keepdims=True)
    cent = h - mean
    var = jnp.mean(cent * cent, axis=-1, keepdims=True)
    inv = lax.rsqrt(var + eps)
    y = cent * inv * gamma_ref[...] + beta_ref[...]
    o_ref[...] = y.astype(o_ref.dtype)


def bert_self_output(hidden_states, input_tensor, params, *, tm=256,
                     matmul_dtype=jnp.float32):
    """hidden_states, input_tensor: [B, S, H] float32 -> [B, S, H]."""
    B, S, H = hidden_states.shape
    M = B * S
    out_dtype = hidden_states.dtype

    x = hidden_states.reshape(M, H)
    res = input_tensor.reshape(M, H)

    # Row tile: MXU-friendly, but never bigger than (padded) M itself.
    tm = int(max(8, min(tm, pl.cdiv(M, 8) * 8)))
    n_row_blocks = pl.cdiv(M, tm)
    Mp = n_row_blocks * tm
    if Mp != M:
        # zero-pad the row tail; LayerNorm of a constant row is finite (eps>0)
        x = jnp.pad(x, ((0, Mp - M), (0, 0)))
        res = jnp.pad(res, ((0, Mp - M), (0, 0)))

    # Matmul operands may be bf16 (halves HBM bytes, doubles MXU peak);
    # accumulation, residual add and LayerNorm stay in f32.
    x_mm = x.astype(matmul_dtype)
    w_mm = params["dense_w"].astype(matmul_dtype)

    kernel = functools.partial(_self_output_kernel,
                               eps=float(params["ln_eps"]))

    itemsize = jnp.dtype(matmul_dtype).itemsize
    cost = pl.CostEstimate(
        flops=2 * Mp * H * H,
        transcendentals=0,
        bytes_accessed=(Mp * H * itemsize        # x (matmul dtype)
                        + Mp * H * 4             # residual (f32)
                        + H * H * itemsize       # weight (resident)
                        + Mp * H * 4),           # output (f32)
    )

    out = pl.pallas_call(
        kernel,
        out_shape=jax.ShapeDtypeStruct((Mp, H), out_dtype),
        grid_spec=pltpu.PrefetchScalarGridSpec(
            num_scalar_prefetch=0,
            grid=(n_row_blocks,),
            in_specs=[
                pl.BlockSpec((tm, H), lambda i: (i, 0)),   # x rows
                pl.BlockSpec((tm, H), lambda i: (i, 0)),   # residual rows
                pl.BlockSpec((H, H), lambda i: (0, 0)),    # dense weight (stays in VMEM)
                pl.BlockSpec((1, H), lambda i: (0, 0)),    # dense bias
                pl.BlockSpec((1, H), lambda i: (0, 0)),    # LN gamma
                pl.BlockSpec((1, H), lambda i: (0, 0)),    # LN beta
            ],
            out_specs=pl.BlockSpec((tm, H), lambda i: (i, 0)),
        ),
        compiler_params=pltpu.CompilerParams(
            dimension_semantics=("parallel",),
        ),
        cost_estimate=cost,
    )(
        x_mm,
        res,
        w_mm,
        params["dense_b"].reshape(1, H),
        params["ln_gamma"].reshape(1, H),
        params["ln_beta"].reshape(1, H),
    )

    return out[:M].reshape(B, S, H)


def init_params(key, hidden_size, layer_norm_eps=1e-12):
    k1, k2, k3, k4 = jax.random.split(key, 4)
    scale = 1.0 / math.sqrt(hidden_size)
    return {
        # torch Linear(H, H), stored as (H_in, H_out) for y = x @ W
        "dense_w": jax.random.uniform(
            k1, (hidden_size, hidden_size), jnp.float32, -scale, scale),
        "dense_b": jax.random.uniform(
            k2, (hidden_size,), jnp.float32, -scale, scale),
        # LayerNorm(H): perturb the default ones/zeros so the affine path is
        # actually exercised.
        "ln_gamma": 1.0
        + 0.01 * jax.random.normal(k3, (hidden_size,), jnp.float32),
        "ln_beta": 0.01 * jax.random.normal(k4, (hidden_size,), jnp.float32),
        "ln_eps": layer_norm_eps,
    }


def reference(hidden_states, input_tensor, params):
    """Pure-JAX reference of BertSelfOutput.forward (eval mode)."""
    h = hidden_states @ params["dense_w"] + params["dense_b"]
    h = h + input_tensor                      # dropout is identity in eval
    mean = jnp.mean(h, axis=-1, keepdims=True)
    var = jnp.mean((h - mean) ** 2, axis=-1, keepdims=True)
    h = (h - mean) / jnp.sqrt(var + params["ln_eps"])
    return h * params["ln_gamma"] + params["ln_beta"]


if __name__ == "__main__":
    # Small BERT-ish config; M = B*S = 400 is NOT a multiple of tm=256, so the
    # cdiv-grid + tail-padding path is exercised.
    B, S, H = 2, 200, 256
    key = jax.random.PRNGKey(0)
    kp, kx, kr = jax.random.split(key, 3)

    params = init_params(kp, hidden_size=H, layer_norm_eps=1e-12)
    hidden_states = jax.random.normal(kx, (B, S, H), jnp.float32)
    input_tensor = jax.random.normal(kr, (B, S, H), jnp.float32)

    ref = reference(hidden_states, input_tensor, params)

    # f32 matmul path — strict check against the reference.
    out_f32 = jax.block_until_ready(
        bert_self_output(hidden_states, input_tensor, params,
                         tm=256, matmul_dtype=jnp.float32))
    assert out_f32.shape == (B, S, H)
    err_f32 = float(jnp.max(jnp.abs(out_f32 - ref)))
    assert jnp.allclose(out_f32, ref, atol=1e-4, rtol=1e-4), err_f32

    # bf16 matmul operands (f32 accumulation + f32 LayerNorm) — looser check.
    out_bf16 = jax.block_until_ready(
        bert_self_output(hidden_states, input_tensor, params,
                         tm=256, matmul_dtype=jnp.bfloat16))
    err_bf16 = float(jnp.max(jnp.abs(out_bf16 - ref)))
    assert jnp.allclose(out_bf16, ref, atol=5e-2, rtol=5e-2), err_bf16

    print("KERNEL_OK")
</pallas_src>

<mosaic_0001>
module attributes {stable_mosaic.version = 11 : i64} {
  func.func @_self_output_kernel(%arg0: i32, %arg1: memref<256x256xf32, #tpu.memory_space<vmem>>, %arg2: memref<256x256xf32, #tpu.memory_space<vmem>>, %arg3: memref<256x256xf32, #tpu.memory_space<vmem>>, %arg4: memref<1x256xf32, #tpu.memory_space<vmem>>, %arg5: memref<1x256xf32, #tpu.memory_space<vmem>>, %arg6: memref<1x256xf32, #tpu.memory_space<vmem>>, %arg7: memref<256x256xf32, #tpu.memory_space<vmem>>) attributes {dimension_semantics = [#tpu.dimension_semantics<parallel>], iteration_bounds = array<i64: 2>, scalar_prefetch = 0 : i64, scratch_operands = 0 : i64, tpu.core_type = #tpu.core_type<tc>, window_params = [{transform_indices = @transform_0, window_bounds = array<i64: 256, 256>}, {transform_indices = @transform_1, window_bounds = array<i64: 256, 256>}, {pipeline_mode = #tpu.pipeline_mode<synchronous>, transform_indices = @transform_2, window_bounds = array<i64: 256, 256>}, {pipeline_mode = #tpu.pipeline_mode<synchronous>, transform_indices = @transform_3, window_bounds = array<i64: 1, 256>}, {pipeline_mode = #tpu.pipeline_mode<synchronous>, transform_indices = @transform_4, window_bounds = array<i64: 1, 256>}, {pipeline_mode = #tpu.pipeline_mode<synchronous>, transform_indices = @transform_5, window_bounds = array<i64: 1, 256>}, {transform_indices = @transform_6, window_bounds = array<i64: 256, 256>}]} {
    %c0 = arith.constant 0 : index
    %c0_0 = arith.constant 0 : index
    %0 = vector.load %arg1[%c0, %c0_0] : memref<256x256xf32, #tpu.memory_space<vmem>>, vector<256x256xf32>
    %c0_1 = arith.constant 0 : index
    %c0_2 = arith.constant 0 : index
    %1 = vector.load %arg3[%c0_1, %c0_2] : memref<256x256xf32, #tpu.memory_space<vmem>>, vector<256x256xf32>
    %cst = arith.constant dense<0.000000e+00> : vector<256x256xf32>
    %2 = tpu.matmul %0, %1, %cst {dimension_numbers = #tpu.dot_dimension_numbers<[1], [0], [0], [1], [0, 0, 1, 1], [], []>} : vector<256x256xf32>, vector<256x256xf32>, vector<256x256xf32> -> vector<256x256xf32>
    %c0_3 = arith.constant 0 : index
    %c0_4 = arith.constant 0 : index
    %3 = vector.load %arg4[%c0_3, %c0_4] : memref<1x256xf32, #tpu.memory_space<vmem>>, vector<1x256xf32>
    %4 = vector.broadcast %3 : vector<1x256xf32> to vector<256x256xf32>
    %5 = arith.addf %2, %4 : vector<256x256xf32>
    %c0_5 = arith.constant 0 : index
    %c0_6 = arith.constant 0 : index
    %6 = vector.load %arg2[%c0_5, %c0_6] : memref<256x256xf32, #tpu.memory_space<vmem>>, vector<256x256xf32>
    %7 = arith.addf %5, %6 : vector<256x256xf32>
    %cst_7 = arith.constant dense<0.000000e+00> : vector<256xf32>
    %8 = vector.multi_reduction <add>, %7, %cst_7 [1] : vector<256x256xf32> to vector<256xf32>
    %9 = vector.shape_cast %8 : vector<256xf32> to vector<256x1xf32>
    %cst_8 = arith.constant 2.560000e+02 : f32
    %10 = vector.broadcast %cst_8 : f32 to vector<256x1xf32>
    %11 = arith.divf %9, %10 : vector<256x1xf32>
    %12 = vector.broadcast %11 : vector<256x1xf32> to vector<256x256xf32>
    %13 = arith.subf %7, %12 : vector<256x256xf32>
    %14 = arith.mulf %13, %13 : vector<256x256xf32>
    %cst_9 = arith.constant dense<0.000000e+00> : vector<256xf32>
    %15 = vector.multi_reduction <add>, %14, %cst_9 [1] : vector<256x256xf32> to vector<256xf32>
    %16 = vector.shape_cast %15 : vector<256xf32> to vector<256x1xf32>
    %cst_10 = arith.constant 2.560000e+02 : f32
    %17 = vector.broadcast %cst_10 : f32 to vector<256x1xf32>
    %18 = arith.divf %16, %17 : vector<256x1xf32>
    %cst_11 = arith.constant 9.99999996E-13 : f32
    %19 = vector.broadcast %cst_11 : f32 to vector<256x1xf32>
    %20 = arith.addf %18, %19 : vector<256x1xf32>
    %21 = math.rsqrt %20 : vector<256x1xf32>
    %22 = vector.broadcast %21 : vector<256x1xf32> to vector<256x256xf32>
    %23 = arith.mulf %13, %22 : vector<256x256xf32>
    %c0_12 = arith.constant 0 : index
    %c0_13 = arith.constant 0 : index
    %24 = vector.load %arg5[%c0_12, %c0_13] : memref<1x256xf32, #tpu.memory_space<vmem>>, vector<1x256xf32>
    %25 = vector.broadcast %24 : vector<1x256xf32> to vector<256x256xf32>
    %26 = arith.mulf %23, %25 : vector<256x256xf32>
    %c0_14 = arith.constant 0 : index
    %c0_15 = arith.constant 0 : index
    %27 = vector.load %arg6[%c0_14, %c0_15] : memref<1x256xf32, #tpu.memory_space<vmem>>, vector<1x256xf32>
    %28 = vector.broadcast %27 : vector<1x256xf32> to vector<256x256xf32>
    %29 = arith.addf %26, %28 : vector<256x256xf32>
    %c0_16 = arith.constant 0 : index
    %c0_17 = arith.constant 0 : index
    %30 = vector.load %arg7[%c0_16, %c0_17] : memref<256x256xf32, #tpu.memory_space<vmem>>, vector<256x256xf32>
    tpu.vector_store %arg7[%c0_16, %c0_17], %29 {strides = array<i32>} : memref<256x256xf32, #tpu.memory_space<vmem>>, vector<256x256xf32>,
    return
  }
  func.func @transform_0(%arg0: i32) -> (i32, i32) {
    %c0_i32 = arith.constant 0 : i32
    %c0_i32_0 = arith.constant 0 : i32
    return %arg0, %c0_i32 : i32, i32
  }
  func.func @transform_1(%arg0: i32) -> (i32, i32) {
    %c0_i32 = arith.constant 0 : i32
    %c0_i32_0 = arith.constant 0 : i32
    return %arg0, %c0_i32 : i32, i32
  }
  func.func @transform_2(%arg0: i32) -> (i32, i32) {
    %c0_i32 = arith.constant 0 : i32
    %c0_i32_0 = arith.constant 0 : i32
    %c0_i32_1 = arith.constant 0 : i32
    return %c0_i32, %c0_i32_0 : i32, i32
  }
  func.func @transform_3(%arg0: i32) -> (i32, i32) {
    %c0_i32 = arith.constant 0 : i32
    %c0_i32_0 = arith.constant 0 : i32
    %c0_i32_1 = arith.constant 0 : i32
    return %c0_i32, %c0_i32_0 : i32, i32
  }
  func.func @transform_4(%arg0: i32) -> (i32, i32) {
    %c0_i32 = arith.constant 0 : i32
    %c0_i32_0 = arith.constant 0 : i32
    %c0_i32_1 = arith.constant 0 : i32
    return %c0_i32, %c0_i32_0 : i32, i32
  }
  func.func @transform_5(%arg0: i32) -> (i32, i32) {
    %c0_i32 = arith.constant 0 : i32
    %c0_i32_0 = arith.constant 0 : i32
    %c0_i32_1 = arith.constant 0 : i32
    return %c0_i32, %c0_i32_0 : i32, i32
  }
  func.func @transform_6(%arg0: i32) -> (i32, i32) {
    %c0_i32 = arith.constant 0 : i32
    %c0_i32_0 = arith.constant 0 : i32
    return %arg0, %c0_i32 : i32, i32
  }
}

</mosaic_0001>

<bundles_post_ra>
// kernel: tpu_custom_call.1
= control target key start
LH: loop header
LB: loop body
LE: loop exit
PB: predicated region body
PF: predicated region fallthrough
CT: control target
= control target key end

     0   :  { %s3424_s0 = inlined_call_operand.hbm [shape: f32[512,256], index: 0, kind: input, shape index: {}]   ;;  %s3425_s1 = inlined_call_operand.hbm [shape: f32[512,256], index: 1, kind: input, shape index: {}]   ;;  %s3426_s2 = inlined_call_operand.hbm [shape: f32[256,256], index: 2, kind: input, shape index: {}]   ;;  %s3427_s3 = inlined_call_operand.vmem [shape: f32[1,256], index: 3, kind: input, shape index: {}]   ;;  %s3428_s4 = inlined_call_operand.vmem [shape: f32[1,256], index: 4, kind: input, shape index: {}]   ;;  %s3429_s5 = inlined_call_operand.vmem [shape: f32[1,256], index: 5, kind: input, shape index: {}]   ;;  %s3430_s6 = inlined_call_operand.hbm [shape: f32[512,256], index: 6, kind: output, shape index: {}]  }
   0x1   :  { %3481 = sst [smem:[#allocation41_spill]] %s3424_s0 }
   0x2   :  { %3482 = sst [smem:[#allocation42_spill]] %s3426_s2 }
   0x3   :  { %11 = vsyncpa [#allocation3], 0 }
   0x4   :  { %13 = vsyncpa [#allocation3 + $0x1], 0 }
   0x5   :  { %14 = vsyncpa [#allocation6], 0 }
   0x6   :  { %16 = vsyncpa [#allocation6 + $0x1], 0 }
   0x7   :  { %17 = vsyncpa [#allocation4], 0 }
   0x8   :  { %19 = vsyncpa [#allocation4 + $0x1], 0  ;;  %s2165_s21 = smov 0   ;;  %s2167_s22 = smov 0  }
   0x9   :  { %s2169_s23 = smov 0   ;;  %s2171_s24 = smov 0  }
   0xa LB: > { %3483 = sst [smem:[#allocation13_spill]] %s2116_s23  ;;  %s2186_s25 = sadd.s32 4294967295, %s2120_s24   ;;  %s2120_s24 = sphi %s2171_s24, %s3579_s24   ;;  %s2116_s23 = sphi %s2169_s23, %s3581_s23   ;;  %s2112_s22 = sphi %s2167_s22, %s3583_s22   ;;  %s2108_s21 = sphi %s2165_s21, %s3582_s21  }
   0xb   : > { %s1703_s26 = sadd.s32 4294967294, %s2120_s24   ;;  %p45_p0 = scmp.ne.s32.totalorder %s2112_s22, %s2108_s21 }
   0xc   : > { %p3431_p1 = scmp.eq.s32.totalorder %s2186_s25, 0  ;;  %p185_p3 = scmp.eq.s32.totalorder %s1703_s26, 1 }
   0xd   : > { %p1704_p5 = scmp.ge.s32.totalorder %s2120_s24, 1  ;;  %p192_p7 = scmp.lt.s32.totalorder %s2120_s24, 3 }
   0xe   : > { %p2195_p4 = por %p3431_p1, %p45_p0  ;;  %p2200_p6 = por %p185_p3, %p45_p0 }
   0xf   : > { %p2205_p8 = pnand %p1704_p5, %p192_p7  ;;  %s2122_s30 = smov [#allocation7]  }
  0x10   : > { %s3484_s27 = scalar_select %p2195_p4, 1, 0 }
  0x11   : > { %s3485_s28 = scalar_select %p2200_p6, 1, 0 }
  0x12   : > { %s3486_s29 = scalar_select %p2205_p8, 1, 0 }
  0x13   : > { %s204_s7 = sshll.u32 %s2122_s30, 4  ;;  %p1838_p9 = pneg %p2205_p8  ;;  %s2209_s7 = int_to_ptr.vmem [resolvable:$true] %s204_s7 }
  0x14   : > { %s2221_s9 = sadd.s32 1, %s2120_s24   ;;  %s32_s10 = sadd.s32 1, %s2116_s23 }
  0x15   : > { %p2216_p11 = pnand %p1838_p9, %p3431_p1  ;;  %3488 = sst [smem:[#allocation14_spill]] %s2221_s9 }
  0x16   : > { %s29_s11 = ssub.s32 %s2120_s24, %s2221_s9  ;;  %s3489_s2 = sld [smem:[#allocation42_spill]] }
  0x17   : > { %p1960_p13 = pneg %p2216_p11 }
  0x1c   : > { %s1958_s14 = scalar_lea.hbm %s3489_s2, 8192 }
  0x1d   : > { %p1959_p12 = scmp.ne.s32.totalorder %s3489_s2, %s1958_s14  ;;  %p1965_p5 = scmp.lt.u32.totalorder %s1958_s14, %s3489_s2 }
  0x1f   : > { %p1961_p0 = pnand %p1960_p13, %p1959_p12 }
  0x21   : > { %p1962_p3 = pneg %p1961_p0 }
  0x23   : > { %p1967_p7 = pnand %p1965_p5, %p1962_p3 }
  0x25   : > { %1970 = shalt.err (!%p1967_p7)
}
  0x26   : > { %s1971_s19 = scalar_lea.vmem %s2209_s7, 8192  ;;  %p1979_p2 = scmp.lt.s32.totalorder %s2209_s7, %s2209_s7 }
  0x27   : > { %p1972_p9 = scmp.ne.s32.totalorder %s2209_s7, %s1971_s19  ;;  %p1980_p6 = scmp.lt.s32.totalorder %s1971_s19, %s1971_s19 }
  0x29   : > { %p1974_p10 = pnand %p1972_p9, %p1960_p13  ;;  %p1981_p4 = por %p1980_p6, %p1979_p2 }
  0x2b   : > { %p1975_p1 = pneg %p1974_p10 }
  0x2d   : > { %p1982_p8 = pnand %p1981_p4, %p1975_p1 }
  0x2f   : > { %1985 = shalt.err (!%p1982_p8)
}
  0x30   : > { %s3434_s20 = smov 256   ;;  %s3436_s26 = smov 16  }
  0x31   : > { %1841 = dma.hbm_to_vmem [thread:$0]  (!%p2216_p11), %s3489_s2, 8192, %s2209_s7, [#allocation6], %s3434_s20, %s3434_s20, %s3436_s26  }
  0x32   : > { %p30_p1 = scmp.eq.s32.totalorder %s29_s11, 0  ;;  %p39_p2 = scmp.ne.s32.totalorder %s2116_s23, %s2112_s22 }
  0x33   : > { %p40_p4 = scmp.eq.s32.totalorder %s2120_s24, 0  ;;  %p1854_p6 = scmp.lt.s32.totalorder %s2120_s24, 2 }
  0x34   : > { %s2255_s13 = scalar_select %p30_p1, %s2116_s23, %s32_s10  }
  0x35   : > { %p41_p8 = por %p40_p4, %p39_p2  ;;  %p3491_p10 = scmp.eq.s32.totalorder %s2186_s25, 1 }
  0x36   : > { %3490 = sst [smem:[#allocation15_spill]] %s2255_s13  ;;  %s227_s8 = sand.u32 1, %s2116_s23  }
  0x37   : > { %p2259_p12 = por %p3491_p10, %p39_p2  ;;  %s1727_s15 = sshll.u32 %s2120_s24, 13 }
  0x38   : > { %s2265_s16 = sshll.u32 %s227_s8, 9  ;;  %s3493_s0 = sld [smem:[#allocation41_spill]] }
  0x39   : > { %s231_s10 = scalar_lea.vmem [#allocation2], %s2265_s16  ;;  %p2273_p11 = pnand %p1854_p6, %p41_p8 }
  0x3a   : > { %s239_s11 = sshll.u32 %s231_s10, 4  ;;  %s2282_s17 = scalar_lea.hbm %s3425_s1, %s1727_s15  ;;  %s2277_s11 = int_to_ptr.vmem [resolvable:$true] %s239_s11 }
  0x3b   : > { %s2284_s18 = scalar_lea.sflag [#allocation3], %s227_s8  ;;  %p1988_p0 = pneg %p2273_p11 }
  0x3e   : > { %s2270_s7 = scalar_lea.hbm %s3493_s0, %s1727_s15  ;;  %s1991_s2 = scalar_lea.hbm %s3493_s0, 16384 }
  0x3f   : > { %s1986_s20 = scalar_lea.hbm %s2270_s7, 8192  ;;  %p1992_p7 = scmp.lt.u32.totalorder %s2270_s7, %s3493_s0 }
  0x40   : > { %p1987_p13 = scmp.ne.s32.totalorder %s2270_s7, %s1986_s20  ;;  %p1993_p9 = scmp.lt.u32.totalorder %s1991_s2, %s1986_s20 }
  0x41   : > { %p1995_p2 = scmp.lt.u32.totalorder %s1986_s20, %s2270_s7 }
  0x42   : > { %p1989_p3 = pnand %p1988_p0, %p1987_p13  ;;  %p1994_p1 = por %p1993_p9, %p1992_p7 }
  0x44   : > { %p1990_p5 = pneg %p1989_p3  ;;  %p1996_p4 = por %p1995_p2, %p1994_p1 }
  0x46   : > { %p1997_p6 = pnand %p1996_p4, %p1990_p5 }
  0x48   : > { %2000 = shalt.err (!%p1997_p6)
}
  0x49   : > { %s2001_s8 = scalar_lea.vmem %s2277_s11, 8192  ;;  %s2125_s26 = smov [#allocation2]  }
  0x4a   : > { %p2002_p8 = scmp.ne.s32.totalorder %s2277_s11, %s2001_s8  ;;  %s2006_s15 = sshll.u32 %s2125_s26, 4  ;;  %s2007_s15 = int_to_ptr.vmem [resolvable:$false] %s2006_s15 }
  0x4b   : > { %s2008_s23 = scalar_lea.vmem %s2007_s15, 16384  ;;  %p2009_p3 = scmp.lt.s32.totalorder %s2277_s11, %s2007_s15 }
  0x4c   : > { %p2004_p10 = pnand %p2002_p8, %p1988_p0  ;;  %p2010_p7 = scmp.lt.s32.totalorder %s2008_s23, %s2001_s8 }
  0x4e   : > { %p2005_p13 = pneg %p2004_p10  ;;  %p2011_p9 = por %p2010_p7, %p2009_p3 }
  0x50   : > { %p2012_p1 = pnand %p2011_p9, %p2005_p13 }
  0x52   : > { %2015 = shalt.err (!%p2012_p1)
}
  0x53   : > { %s3495_s2 = smov 16   ;;  %s3496_s20 = smov 256  }
  0x54   : > { %1845 = dma.hbm_to_vmem [thread:$0]  (!%p2273_p11), %s2270_s7, 8192, %s2277_s11, %s2284_s18, %s3496_s20, %s3496_s20, %s3495_s2  }
  0x55   : > { %s253_s13 = scalar_lea.vmem [#allocation5], %s2265_s16  ;;  %s249_s12 = sand.u32 1, %s2120_s24  }
  0x56   : > { %s261_s30 = sshll.u32 %s253_s13, 4  ;;  %s2319_s10 = scalar_lea.sflag [#allocation6], %s249_s12  ;;  %s2317_s30 = int_to_ptr.vmem [resolvable:$true] %s261_s30 }
  0x57   : > { %s2016_s8 = scalar_lea.hbm %s2282_s17, 8192  ;;  %s2021_s23 = scalar_lea.hbm %s3425_s1, 16384 }
  0x58   : > { %p2017_p5 = scmp.ne.s32.totalorder %s2282_s17, %s2016_s8  ;;  %p2022_p6 = scmp.lt.u32.totalorder %s2282_s17, %s3425_s1 }
  0x59   : > { %p2023_p8 = scmp.lt.u32.totalorder %s2021_s23, %s2016_s8  ;;  %p2025_p13 = scmp.lt.u32.totalorder %s2016_s8, %s2282_s17 }
  0x5a   : > { %p2019_p2 = pnand %p2017_p5, %p1988_p0 }
  0x5b   : > { %p2024_p10 = por %p2023_p8, %p2022_p6 }
  0x5c   : > { %p2020_p4 = pneg %p2019_p2 }
  0x5d   : > { %p2026_p3 = por %p2025_p13, %p2024_p10 }
  0x5f   : > { %p2027_p7 = pnand %p2026_p3, %p2020_p4 }
  0x61   : > { %2030 = shalt.err (!%p2027_p7)
}
  0x62   : > { %s2031_s16 = scalar_lea.vmem %s2317_s30, 8192  ;;  %s2126_s7 = smov [#allocation5]  }
  0x63   : > { %p2032_p9 = scmp.ne.s32.totalorder %s2317_s30, %s2031_s16  ;;  %s2036_s11 = sshll.u32 %s2126_s7, 4  ;;  %s2037_s11 = int_to_ptr.vmem [resolvable:$false] %s2036_s11 }
  0x64   : > { %s2038_s0 = scalar_lea.vmem %s2037_s11, 16384  ;;  %p2039_p2 = scmp.lt.s32.totalorder %s2317_s30, %s2037_s11 }
  0x65   : > { %p2034_p1 = pnand %p2032_p9, %p1988_p0  ;;  %p2040_p6 = scmp.lt.s32.totalorder %s2038_s0, %s2031_s16 }
  0x67   : > { %p2035_p5 = pneg %p2034_p1  ;;  %p2041_p8 = por %p2040_p6, %p2039_p2 }
  0x69   : > { %p2042_p10 = pnand %p2041_p8, %p2035_p5 }
  0x6b   : > { %2045 = shalt.err (!%p2042_p10)
}
  0x6c   : > { %1848 = dma.hbm_to_vmem [thread:$0]  (!%p2273_p11), %s2282_s17, 8192, %s2317_s30, %s2319_s10, %s3496_s20, %s3496_s20, %s3495_s2  }
  0x6d   : > { %p3497_p0 = scmp.ne.s32.totalorder %s3486_s29, 0 }
  0x6f   : > { %273 = sbr.rel (%p3497_p0) target bundleno = 818 (0x332), region = 44 }
  0x76   : > { %s2351_s9 = sand.u32 1, %s2112_s22   ;;  %p3498_p4 = scmp.ne.s32.totalorder %s3484_s27, 0 }
  0x77   : > { %s2354_s18 = sshll.u32 %s2351_s9, 9  ;;  %s276_s19 = scalar_lea.sflag [#allocation3], %s2351_s9 }
  0x78   : > { %s2358_s13 = scalar_lea.vmem [#allocation2], %s2354_s18 }
  0x79   : > { %2091 = dma.done.wait (%p3498_p4), %s276_s19, 8192  }
  0x7a   : > { %2093 = vsyncadd (%p3498_p4), %s276_s19, 4294959104  ;;  %s284_s29 = sand.u32 1, %s2186_s25   ;;  %s2366_s2 = scalar_lea.vmem [#allocation5], %s2354_s18 }
  0x7b   : > { %s285_s17 = scalar_lea.sflag [#allocation6], %s284_s29 }
  0x7c   : > { %2095 = dma.done.wait (%p3498_p4), %s285_s17, 8192  }
  0x7d   : > { %2097 = vsyncadd (%p3498_p4), %s285_s17, 4294959104  ;;  %p3499_p11 = scmp.eq.s32.totalorder %s2186_s25, 0 }
  0x7f   : > { %2099 = dma.done.wait (%p3499_p11), [#allocation6], 8192   ;;  %p3500_p13 = pmov %p3499_p11 }
  0x80   : > { %v394_v0 = vld [vmem:[#allocation7 + $0x8] sm:$0xff]  ;;  %v396_v1 = vld [vmem:[#allocation7 + $0x18] sm:$0xff]  ;;  %v393_v2 = vld [vmem:[#allocation7] sm:$0xff]  ;;  %s3120_s26 = scalar_lea.vmem [#allocation8], %s2354_s18  ;;  %s1731_s15 = sshll.u32 %s2186_s25, 13 }
  0x81   : > { %2101 = vsyncadd (%p3500_p13), [#allocation6], 4294959104  ;;  %v1732_v3 = vpack.c.bf16 %v396_v1, %v394_v0  ;;  %v395_v4 = vld [vmem:[#allocation7 + $0x10] sm:$0xff]  ;;  %v398_v5 = vld [vmem:[#allocation7 + $0x28] sm:$0xff]  ;;  %s1598_s23 = sshll.u32 %s3120_s26, 4  ;;  %s3372_s7 = scalar_lea.hbm %s3430_s6, %s1731_s15  ;;  %s3374_s23 = int_to_ptr.vmem [resolvable:$true] %s1598_s23 }
  0x82   : > { %v400_v6 = vld [vmem:[#allocation7 + $0x38] sm:$0xff]  ;;  %v1734_v7 = vpack.c.bf16 %v395_v4, %v393_v2  ;;  %v397_v9 = vld [vmem:[#allocation7 + $0x20] sm:$0xff]  ;;  %v399_v10 = vld [vmem:[#allocation7 + $0x30] sm:$0xff]  ;;  %s1584_s11 = scalar_lea.sflag [#allocation4], %s2351_s9  ;;  %s2046_s0 = scalar_lea.vmem %s3374_s23, 8192 }
  0x83   : > { %v1736_v8 = vpack.c.bf16 %v400_v6, %v398_v5  ;;  %v402_v11 = vld [vmem:[#allocation7 + $0x48] sm:$0xff]  ;;  %1733 = vmatprep.subr.bf16.mxu0 %v1732_v3  ;;  %1796 = vmatprep.subr.bf16.mxu1 %v1732_v3  ;;  %v404_v12 = vld [vmem:[#allocation7 + $0x58] sm:$0xff]  ;;  %v1738_v13 = vpack.c.bf16 %v399_v10, %v397_v9  ;;  %v401_v15 = vld [vmem:[#allocation7 + $0x40] sm:$0xff]  ;;  %p2047_p3 = scmp.ne.s32.totalorder %s3374_s23, %s2046_s0  ;;  %s2127_s18 = smov [#allocation8]  }
  0x84   : > { %1735 = vmatpush1.bf16.msra.mxu0 %v1734_v7  ;;  %1812 = vmatpush1.bf16.msra.mxu1 %v1734_v7  ;;  %v1740_v14 = vpack.c.bf16 %v404_v12, %v402_v11  ;;  %v403_v16 = vld [vmem:[#allocation7 + $0x50] sm:$0xff]  ;;  %v406_v17 = vld [vmem:[#allocation7 + $0x68] sm:$0xff]  ;;  %v408_v18 = vld [vmem:[#allocation7 + $0x78] sm:$0xff]  ;;  %s2050_s19 = sshll.u32 %s2127_s18, 4  ;;  %s2051_s19 = int_to_ptr.vmem [resolvable:$false] %s2050_s19 }
  0x85   : > { %1737 = vmatprep.subr.bf16.mxu0 %v1736_v8  ;;  %1797 = vmatprep.subr.bf16.mxu1 %v1736_v8  ;;  %v1742_v19 = vpack.c.bf16 %v403_v16, %v401_v15  ;;  %v1744_v20 = vpack.c.bf16 %v408_v18, %v406_v17  ;;  %v405_v21 = vld [vmem:[#allocation7 + $0x60] sm:$0xff]  ;;  %v407_v22 = vld [vmem:[#allocation7 + $0x70] sm:$0xff]  ;;  %v410_v23 = vld [vmem:[#allocation7 + $0x88] sm:$0xff]  ;;  %p2048_p7 = pnand %p2047_p3, %p2259_p12  ;;  %p2053_p1 = scmp.lt.s32.totalorder %s3374_s23, %s2051_s19 }
  0x86   : > { %v412_v24 = vld [vmem:[#allocation7 + $0x98] sm:$0xff]  ;;  %v1746_v25 = vpack.c.bf16 %v407_v22, %v405_v21  ;;  %v409_v27 = vld [vmem:[#allocation7 + $0x80] sm:$0xff]  ;;  %v411_v28 = vld [vmem:[#allocation7 + $0x90] sm:$0xff] }
  0x87   : > { %v1748_v26 = vpack.c.bf16 %v412_v24, %v410_v23  ;;  %v414_v29 = vld [vmem:[#allocation7 + $0xa8] sm:$0xff]  ;;  %v416_v30 = vld [vmem:[#allocation7 + $0xb8] sm:$0xff]  ;;  %v1750_v31 = vpack.c.bf16 %v411_v28, %v409_v27  ;;  %v413_v33 = vld [vmem:[#allocation7 + $0xa0] sm:$0xff]  ;;  %p2049_p9 = pneg %p2048_p7 }
  0x88   : > { %1739 = vmatpush1.bf16.msra.mxu0 %v1738_v13  ;;  %1813 = vmatpush1.bf16.msra.mxu1 %v1738_v13  ;;  %v1752_v32 = vpack.c.bf16 %v416_v30, %v414_v29  ;;  %v415_v34 = vld [vmem:[#allocation7 + $0xb0] sm:$0xff]  ;;  %v418_v35 = vld [vmem:[#allocation7 + $0xc8] sm:$0xff]  ;;  %v420_v36 = vld [vmem:[#allocation7 + $0xd8] sm:$0xff] }
  0x89   : > { %1741 = vmatprep.subr.bf16.mxu0 %v1740_v14  ;;  %1798 = vmatprep.subr.bf16.mxu1 %v1740_v14  ;;  %v1754_v37 = vpack.c.bf16 %v415_v34, %v413_v33  ;;  %v417_v38 = vld [vmem:[#allocation7 + $0xc0] sm:$0xff]  ;;  %v1756_v39 = vpack.c.bf16 %v420_v36, %v418_v35  ;;  %v419_v40 = vld [vmem:[#allocation7 + $0xd0] sm:$0xff]  ;;  %v330_v41 = vld [vmem:[%s2358_s13 + $0x8] sm:$0xff] }
  0x8a   : > { %v362_v42 = vld [vmem:[%s2358_s13 + $0x108] sm:$0xff]  ;;  %v424_v44 = vld [vmem:[#allocation7 + $0xf8] sm:$0xff]  ;;  %533 = vmatprep.mubr.f32.mxu0 %v330_v41  ;;  %v1758_v45 = vpack.c.bf16 %v419_v40, %v417_v38  ;;  %v421_v47 = vld [vmem:[#allocation7 + $0xe0] sm:$0xff] }
  0x8b   : > { %v422_v43 = vld [vmem:[#allocation7 + $0xe8] sm:$0xff]  ;;  %629 = vmatprep.mubr.f32.mxu1 %v362_v42  ;;  %v423_v48 = vld [vmem:[#allocation7 + $0xf0] sm:$0xff]  ;;  %v428_v50 = vld [vmem:[#allocation7 + $0x118] sm:$0xff] }
  0x8c   : > { %1743 = vmatpush1.bf16.msra.mxu0 %v1742_v19  ;;  %1814 = vmatpush1.bf16.msra.mxu1 %v1742_v19  ;;  %v1760_v46 = vpack.c.bf16 %v424_v44, %v422_v43  ;;  %v426_v49 = vld [vmem:[#allocation7 + $0x108] sm:$0xff]  ;;  %v1762_v51 = vpack.c.bf16 %v423_v48, %v421_v47  ;;  %v425_v53 = vld [vmem:[#allocation7 + $0x100] sm:$0xff]  ;;  %v427_v54 = vld [vmem:[#allocation7 + $0x110] sm:$0xff] }
  0x8d   : > { %1745 = vmatprep.subr.bf16.mxu0 %v1744_v20  ;;  %1799 = vmatprep.subr.bf16.mxu1 %v1744_v20  ;;  %v1764_v52 = vpack.c.bf16 %v428_v50, %v426_v49  ;;  %v430_v55 = vld [vmem:[#allocation7 + $0x128] sm:$0xff]  ;;  %v432_v56 = vld [vmem:[#allocation7 + $0x138] sm:$0xff]  ;;  %v1766_v57 = vpack.c.bf16 %v427_v54, %v425_v53  ;;  %v429_v59 = vld [vmem:[#allocation7 + $0x120] sm:$0xff] }
  0x8e   : > { %v1768_v58 = vpack.c.bf16 %v432_v56, %v430_v55  ;;  %v431_v60 = vld [vmem:[#allocation7 + $0x130] sm:$0xff]  ;;  %v434_v61 = vld [vmem:[#allocation7 + $0x148] sm:$0xff]  ;;  %v436_v62 = vld [vmem:[#allocation7 + $0x158] sm:$0xff] }
  0x8f   : > { %v1770_v63 = vpack.c.bf16 %v431_v60, %v429_v59  ;;  %v1772_v0 = vpack.c.bf16 %v436_v62, %v434_v61  ;;  %v433_v1 = vld [vmem:[#allocation7 + $0x140] sm:$0xff]  ;;  %v435_v2 = vld [vmem:[#allocation7 + $0x150] sm:$0xff]  ;;  %v438_v3 = vld [vmem:[#allocation7 + $0x168] sm:$0xff] }
  0x90   : > { %1747 = vmatpush1.bf16.msra.mxu0 %v1746_v25  ;;  %1815 = vmatpush1.bf16.msra.mxu1 %v1746_v25  ;;  %v440_v4 = vld [vmem:[#allocation7 + $0x178] sm:$0xff]  ;;  %v1774_v5 = vpack.c.bf16 %v435_v2, %v433_v1  ;;  %v437_v7 = vld [vmem:[#allocation7 + $0x160] sm:$0xff]  ;;  %v439_v8 = vld [vmem:[#allocation7 + $0x170] sm:$0xff] }
  0x91   : > { %1749 = vmatprep.subr.bf16.mxu0 %v1748_v26  ;;  %1800 = vmatprep.subr.bf16.mxu1 %v1748_v26  ;;  %v1776_v6 = vpack.c.bf16 %v440_v4, %v438_v3  ;;  %v442_v9 = vld [vmem:[#allocation7 + $0x188] sm:$0xff]  ;;  %v444_v10 = vld [vmem:[#allocation7 + $0x198] sm:$0xff]  ;;  %v1778_v11 = vpack.c.bf16 %v439_v8, %v437_v7  ;;  %v441_v13 = vld [vmem:[#allocation7 + $0x180] sm:$0xff] }
  0x92   : > { %v1780_v12 = vpack.c.bf16 %v444_v10, %v442_v9  ;;  %v443_v14 = vld [vmem:[#allocation7 + $0x190] sm:$0xff]  ;;  %v446_v15 = vld [vmem:[#allocation7 + $0x1a8] sm:$0xff]  ;;  %v448_v16 = vld [vmem:[#allocation7 + $0x1b8] sm:$0xff] }
  0x93   : > { %v1782_v17 = vpack.c.bf16 %v443_v14, %v441_v13  ;;  %v1784_v18 = vpack.c.bf16 %v448_v16, %v446_v15  ;;  %v445_v19 = vld [vmem:[#allocation7 + $0x1a0] sm:$0xff]  ;;  %v447_v20 = vld [vmem:[#allocation7 + $0x1b0] sm:$0xff]  ;;  %v450_v21 = vld [vmem:[#allocation7 + $0x1c8] sm:$0xff] }
  0x94   : > { %1751 = vmatpush1.bf16.msra.mxu0 %v1750_v31  ;;  %1816 = vmatpush1.bf16.msra.mxu1 %v1750_v31  ;;  %v452_v22 = vld [vmem:[#allocation7 + $0x1d8] sm:$0xff]  ;;  %v1786_v23 = vpack.c.bf16 %v447_v20, %v445_v19  ;;  %v449_v25 = vld [vmem:[#allocation7 + $0x1c0] sm:$0xff]  ;;  %v451_v26 = vld [vmem:[#allocation7 + $0x1d0] sm:$0xff] }
  0x95   : > { %1753 = vmatprep.subr.bf16.mxu0 %v1752_v32  ;;  %1801 = vmatprep.subr.bf16.mxu1 %v1752_v32  ;;  %v1788_v24 = vpack.c.bf16 %v452_v22, %v450_v21  ;;  %v454_v27 = vld [vmem:[#allocation7 + $0x1e8] sm:$0xff]  ;;  %v456_v28 = vld [vmem:[#allocation7 + $0x1f8] sm:$0xff]  ;;  %v1790_v29 = vpack.c.bf16 %v451_v26, %v449_v25  ;;  %v453_v31 = vld [vmem:[#allocation7 + $0x1e0] sm:$0xff] }
  0x96   : > { %v1792_v30 = vpack.c.bf16 %v456_v28, %v454_v27  ;;  %v455_v32 = vld [vmem:[#allocation7 + $0x1f0] sm:$0xff]  ;;  %v329_v34 = vld [vmem:[%s2358_s13] sm:$0xff]  ;;  %v332_v36 = vld [vmem:[%s2358_s13 + $0x18] sm:$0xff] }
  0x97   : > { %v1794_v33 = vpack.c.bf16 %v455_v32, %v453_v31  ;;  %v361_v35 = vld [vmem:[%s2358_s13 + $0x100] sm:$0xff]  ;;  %v331_v38 = vld [vmem:[%s2358_s13 + $0x10] sm:$0xff]  ;;  %v334_v40 = vld [vmem:[%s2358_s13 + $0x28] sm:$0xff]  ;;  %v459_v32 = vlaneseq }
  0x98   : > { %1755 = vmatpush1.bf16.msra.mxu0 %v1754_v37  ;;  %1817 = vmatpush1.bf16.msra.mxu1 %v1754_v37  ;;  %v364_v37 = vld [vmem:[%s2358_s13 + $0x118] sm:$0xff]  ;;  %v366_v41 = vld [vmem:[%s2358_s13 + $0x128] sm:$0xff]  ;;  %v333_v42 = vld [vmem:[%s2358_s13 + $0x20] sm:$0xff] }
  0x99   : > { %1757 = vmatprep.subr.bf16.mxu0 %v1756_v39  ;;  %1802 = vmatprep.subr.bf16.mxu1 %v1756_v39  ;;  %v363_v39 = vld [vmem:[%s2358_s13 + $0x110] sm:$0xff]  ;;  %v365_v43 = vld [vmem:[%s2358_s13 + $0x120] sm:$0xff]  ;;  %v336_v44 = vld [vmem:[%s2358_s13 + $0x38] sm:$0xff] }
  0x9a   : > { %v367_v47 = vld [vmem:[%s2358_s13 + $0x130] sm:$0xff]  ;;  %v338_v48 = vld [vmem:[%s2358_s13 + $0x48] sm:$0xff]  ;;  %v337_v50 = vld [vmem:[%s2358_s13 + $0x40] sm:$0xff] }
  0x9b   : > { %v370_v49 = vld [vmem:[%s2358_s13 + $0x148] sm:$0xff]  ;;  %v372_v53 = vld [vmem:[%s2358_s13 + $0x158] sm:$0xff]  ;;  %v339_v54 = vld [vmem:[%s2358_s13 + $0x50] sm:$0xff] }
  0x9c   : > { %1759 = vmatpush1.bf16.msra.mxu0 %v1758_v45  ;;  %1818 = vmatpush1.bf16.msra.mxu1 %v1758_v45  ;;  %v368_v45 = vld [vmem:[%s2358_s13 + $0x138] sm:$0xff]  ;;  %v371_v55 = vld [vmem:[%s2358_s13 + $0x150] sm:$0xff]  ;;  %v342_v56 = vld [vmem:[%s2358_s13 + $0x68] sm:$0xff] }
  0x9d   : > { %1761 = vmatprep.subr.bf16.mxu0 %v1760_v46  ;;  %1803 = vmatprep.subr.bf16.mxu1 %v1760_v46  ;;  %v335_v46 = vld [vmem:[%s2358_s13 + $0x30] sm:$0xff]  ;;  %v373_v59 = vld [vmem:[%s2358_s13 + $0x160] sm:$0xff]  ;;  %v344_v60 = vld [vmem:[%s2358_s13 + $0x78] sm:$0xff] }
  0x9e   : > { %v376_v61 = vld [vmem:[%s2358_s13 + $0x178] sm:$0xff]  ;;  %v343_v62 = vld [vmem:[%s2358_s13 + $0x70] sm:$0xff]  ;;  %v378_v1 = vld [vmem:[%s2358_s13 + $0x188] sm:$0xff] }
  0x9f   : > { %v345_v2 = vld [vmem:[%s2358_s13 + $0x80] sm:$0xff]  ;;  %v348_v4 = vld [vmem:[%s2358_s13 + $0x98] sm:$0xff]  ;;  %v379_v7 = vld [vmem:[%s2358_s13 + $0x190] sm:$0xff] }
  0xa0   : > { %1763 = vmatpush1.bf16.msra.mxu0 %v1762_v51  ;;  %1819 = vmatpush1.bf16.msra.mxu1 %v1762_v51  ;;  %v369_v51 = vld [vmem:[%s2358_s13 + $0x140] sm:$0xff]  ;;  %v350_v8 = vld [vmem:[%s2358_s13 + $0xa8] sm:$0xff]  ;;  %v384_v13 = vld [vmem:[%s2358_s13 + $0x1b8] sm:$0xff] }
  0xa1   : > { %1765 = vmatprep.subr.bf16.mxu0 %v1764_v52  ;;  %1804 = vmatprep.subr.bf16.mxu1 %v1764_v52  ;;  %v340_v52 = vld [vmem:[%s2358_s13 + $0x58] sm:$0xff]  ;;  %v377_v3 = vld [vmem:[%s2358_s13 + $0x180] sm:$0xff]  ;;  %v382_v9 = vld [vmem:[%s2358_s13 + $0x1a8] sm:$0xff] }
  0xa2   : > { %v349_v10 = vld [vmem:[%s2358_s13 + $0xa0] sm:$0xff]  ;;  %v351_v14 = vld [vmem:[%s2358_s13 + $0xb0] sm:$0xff]  ;;  %v354_v16 = vld [vmem:[%s2358_s13 + $0xc8] sm:$0xff] }
  0xa3   : > { %v383_v15 = vld [vmem:[%s2358_s13 + $0x1b0] sm:$0xff]  ;;  %v385_v19 = vld [vmem:[%s2358_s13 + $0x1c0] sm:$0xff]  ;;  %v356_v20 = vld [vmem:[%s2358_s13 + $0xd8] sm:$0xff] }
  0xa4   : > { %1767 = vmatpush1.bf16.msra.mxu0 %v1766_v57  ;;  %1820 = vmatpush1.bf16.msra.mxu1 %v1766_v57  ;;  %v374_v57 = vld [vmem:[%s2358_s13 + $0x168] sm:$0xff]  ;;  %v388_v21 = vld [vmem:[%s2358_s13 + $0x1d8] sm:$0xff]  ;;  %v355_v22 = vld [vmem:[%s2358_s13 + $0xd0] sm:$0xff] }
  0xa5   : > { %1769 = vmatprep.subr.bf16.mxu0 %v1768_v58  ;;  %1805 = vmatprep.subr.bf16.mxu1 %v1768_v58  ;;  %v341_v58 = vld [vmem:[%s2358_s13 + $0x60] sm:$0xff]  ;;  %v390_v25 = vld [vmem:[%s2358_s13 + $0x1e8] sm:$0xff]  ;;  %v360_v28 = vld [vmem:[%s2358_s13 + $0xf8] sm:$0xff] }
  0xa6   : > { %v357_v26 = vld [vmem:[%s2358_s13 + $0xe0] sm:$0xff]  ;;  %v391_v31 = vld [vmem:[%s2358_s13 + $0x1f0] sm:$0xff] }
  0xa7   : > { %v389_v27 = vld [vmem:[%s2358_s13 + $0x1e0] sm:$0xff] }
  0xa8   : > { %1771 = vmatpush1.bf16.msra.mxu0 %v1770_v63  ;;  %1821 = vmatpush1.bf16.msra.mxu1 %v1770_v63  ;;  %v375_v63 = vld [vmem:[%s2358_s13 + $0x170] sm:$0xff] }
  0xa9   : > { %1773 = vmatprep.subr.bf16.mxu0 %v1772_v0  ;;  %1806 = vmatprep.subr.bf16.mxu1 %v1772_v0  ;;  %v346_v0 = vld [vmem:[%s2358_s13 + $0x88] sm:$0xff] }
  0xac   : > { %1775 = vmatpush1.bf16.msra.mxu0 %v1774_v5  ;;  %1822 = vmatpush1.bf16.msra.mxu1 %v1774_v5  ;;  %v380_v5 = vld [vmem:[%s2358_s13 + $0x198] sm:$0xff] }
  0xad   : > { %1777 = vmatprep.subr.bf16.mxu0 %v1776_v6  ;;  %1807 = vmatprep.subr.bf16.mxu1 %v1776_v6  ;;  %v347_v6 = vld [vmem:[%s2358_s13 + $0x90] sm:$0xff] }
  0xb0   : > { %1779 = vmatpush1.bf16.msra.mxu0 %v1778_v11  ;;  %1823 = vmatpush1.bf16.msra.mxu1 %v1778_v11  ;;  %v381_v11 = vld [vmem:[%s2358_s13 + $0x1a0] sm:$0xff] }
  0xb1   : > { %1781 = vmatprep.subr.bf16.mxu0 %v1780_v12  ;;  %1808 = vmatprep.subr.bf16.mxu1 %v1780_v12  ;;  %v352_v12 = vld [vmem:[%s2358_s13 + $0xb8] sm:$0xff] }
  0xb4   : > { %1783 = vmatpush1.bf16.msra.mxu0 %v1782_v17  ;;  %1824 = vmatpush1.bf16.msra.mxu1 %v1782_v17  ;;  %v386_v17 = vld [vmem:[%s2358_s13 + $0x1c8] sm:$0xff] }
  0xb5   : > { %1785 = vmatprep.subr.bf16.mxu0 %v1784_v18  ;;  %1809 = vmatprep.subr.bf16.mxu1 %v1784_v18  ;;  %v353_v18 = vld [vmem:[%s2358_s13 + $0xc0] sm:$0xff] }
  0xb8   : > { %1787 = vmatpush1.bf16.msra.mxu0 %v1786_v23  ;;  %1825 = vmatpush1.bf16.msra.mxu1 %v1786_v23  ;;  %v387_v23 = vld [vmem:[%s2358_s13 + $0x1d0] sm:$0xff] }
  0xb9   : > { %1789 = vmatprep.subr.bf16.mxu0 %v1788_v24  ;;  %1810 = vmatprep.subr.bf16.mxu1 %v1788_v24  ;;  %v358_v24 = vld [vmem:[%s2358_s13 + $0xe8] sm:$0xff] }
  0xbc   : > { %1791 = vmatpush1.bf16.msra.mxu0 %v1790_v29  ;;  %1826 = vmatpush1.bf16.msra.mxu1 %v1790_v29  ;;  %v392_v29 = vld [vmem:[%s2358_s13 + $0x1f8] sm:$0xff] }
  0xbd   : > { %1793 = vmatprep.subr.bf16.mxu0 %v1792_v30  ;;  %1811 = vmatprep.subr.bf16.mxu1 %v1792_v30  ;;  %v359_v30 = vld [vmem:[%s2358_s13 + $0xf0] sm:$0xff]  ;;  %s2052_s13 = scalar_lea.vmem %s2051_s19, 16384 }
  0xbe   : > { %p2054_p5 = scmp.lt.s32.totalorder %s2052_s13, %s2046_s0 }
  0xc0   : > { %1795 = vmatpush1.bf16.msra.mxu0 %v1794_v33  ;;  %1827 = vmatpush1.bf16.msra.mxu1 %v1794_v33  ;;  %v460_v33 = vshrl.u32 %v459_v32, 7  ;;  %v733_v32 = vld [vmem:[%s2366_s2 + $0x38] sm:$0xff]  ;;  %p2055_p2 = por %p2054_p5, %p2053_p1 }
  0xc2   : > { %p2056_p6 = pnand %p2055_p2, %p2049_p9 }
  0xc3   : > { %534 = vmatmul.mubr.f32.vlgmr.msra.gmra.mrb[0].mxu0 %v329_v34  ;;  %630 = vmatmul.mubr.f32.vlgmr.msra.gmra.mrb[0].mxu1 %v361_v35  ;;  %v2440_v34 = vsub.s32 0, %v460_v33  ;;  %v457_v35 = vld [vmem:[%s3427_s3] sm:$0x3] }
  0xc4   : > { %539 = vmatprep.mubr.f32.mxu0 %v332_v36  ;;  %635 = vmatprep.mubr.f32.mxu1 %v364_v37  ;;  %v2445_v36 = vsub.s32 1, %v460_v33 }
  0xc5   : > { %3501 = vst [vmem:[#allocation16_spill] sm:$0xff] %v2440_v34  ;;  %v2448_v37 = vrot.slane %v457_v35, %v2440_v34 }
  0xc6   : > { %3502 = vst [vmem:[#allocation17_spill] sm:$0xff] %v2445_v36 }
  0xc7   : > { %540 = vmatmul.mubr.f32.gmra.mrb[2].mxu0 %v331_v38  ;;  %636 = vmatmul.mubr.f32.gmra.mrb[2].mxu1 %v363_v39  ;;  %v2451_v38 = vrot.slane %v457_v35, %v2445_v36  ;;  %v764_v35 = vld [vmem:[%s2366_s2 + $0x130] sm:$0xff]  ;;  %v750_v36 = vld [vmem:[%s2366_s2 + $0xc0] sm:$0xff] }
  0xc8   : > { %545 = vmatprep.mubr.f32.mxu0 %v334_v40  ;;  %641 = vmatprep.mubr.f32.mxu1 %v366_v41  ;;  %v726_v41 = vld [vmem:[%s2366_s2] sm:$0xff] }
  0xcb   : > { %546 = vmatmul.mubr.f32.gmra.mrb[4].mxu0 %v333_v42  ;;  %642 = vmatmul.mubr.f32.gmra.mrb[4].mxu1 %v365_v43 }
  0xcc   : > { %551 = vmatprep.mubr.f32.mxu0 %v336_v44  ;;  %647 = vmatprep.mubr.f32.mxu1 %v368_v45  ;;  %v758_v45 = vld [vmem:[%s2366_s2 + $0x100] sm:$0xff] }
  0xcf   : > { %552 = vmatmul.mubr.f32.gmra.mrb[6].mxu0 %v335_v46  ;;  %648 = vmatmul.mubr.f32.gmra.mrb[6].mxu1 %v367_v47  ;;  %v759_v47 = vld [vmem:[%s2366_s2 + $0x108] sm:$0xff] }
  0xd0   : > { %557 = vmatprep.mubr.f32.mxu0 %v338_v48  ;;  %653 = vmatprep.mubr.f32.mxu1 %v370_v49  ;;  %v727_v48 = vld [vmem:[%s2366_s2 + $0x8] sm:$0xff] }
  0xd3   : > { %558 = vmatmul.mubr.f32.gmra.mrb[8].mxu0 %v337_v50  ;;  %654 = vmatmul.mubr.f32.gmra.mrb[8].mxu1 %v369_v51 }
  0xd4   : > { %563 = vmatprep.mubr.f32.mxu0 %v340_v52  ;;  %659 = vmatprep.mubr.f32.mxu1 %v372_v53 }
  0xd7   : > { %564 = vmatmul.mubr.f32.gmra.mrb[10].mxu0 %v339_v54  ;;  %660 = vmatmul.mubr.f32.gmra.mrb[10].mxu1 %v371_v55 }
  0xd8   : > { %569 = vmatprep.mubr.f32.mxu0 %v342_v56  ;;  %665 = vmatprep.mubr.f32.mxu1 %v374_v57  ;;  %v760_v57 = vld [vmem:[%s2366_s2 + $0x110] sm:$0xff] }
  0xdb   : > { %570 = vmatmul.mubr.f32.gmra.mrb[12].mxu0 %v341_v58  ;;  %666 = vmatmul.mubr.f32.gmra.mrb[12].mxu1 %v373_v59 }
  0xdc   : > { %575 = vmatprep.mubr.f32.mxu0 %v344_v60  ;;  %671 = vmatprep.mubr.f32.mxu1 %v376_v61  ;;  %v728_v61 = vld [vmem:[%s2366_s2 + $0x10] sm:$0xff] }
  0xdf   : > { %576 = vmatmul.mubr.f32.gmra.mrb[14].mxu0 %v343_v62  ;;  %672 = vmatmul.mubr.f32.gmra.mrb[14].mxu1 %v375_v63  ;;  %v729_v63 = vld [vmem:[%s2366_s2 + $0x18] sm:$0xff] }
  0xe0   : > { %581 = vmatprep.mubr.f32.mxu0 %v346_v0  ;;  %677 = vmatprep.mubr.f32.mxu1 %v378_v1  ;;  %v761_v0 = vld [vmem:[%s2366_s2 + $0x118] sm:$0xff] }
  0xe3   : > { %582 = vmatmul.mubr.f32.gmra.mrb[16].mxu0 %v345_v2  ;;  %678 = vmatmul.mubr.f32.gmra.mrb[16].mxu1 %v377_v3 }
  0xe4   : > { %587 = vmatprep.mubr.f32.mxu0 %v348_v4  ;;  %683 = vmatprep.mubr.f32.mxu1 %v380_v5 }
  0xe7   : > { %588 = vmatmul.mubr.f32.gmra.mrb[18].mxu0 %v347_v6  ;;  %684 = vmatmul.mubr.f32.gmra.mrb[18].mxu1 %v379_v7 }
  0xe8   : > { %593 = vmatprep.mubr.f32.mxu0 %v350_v8  ;;  %689 = vmatprep.mubr.f32.mxu1 %v382_v9  ;;  %v730_v8 = vld [vmem:[%s2366_s2 + $0x20] sm:$0xff] }
  0xeb   : > { %594 = vmatmul.mubr.f32.gmra.mrb[20].mxu0 %v349_v10  ;;  %690 = vmatmul.mubr.f32.gmra.mrb[20].mxu1 %v381_v11  ;;  %v762_v10 = vld [vmem:[%s2366_s2 + $0x120] sm:$0xff] }
  0xec   : > { %599 = vmatprep.mubr.f32.mxu0 %v352_v12  ;;  %695 = vmatprep.mubr.f32.mxu1 %v384_v13 }
  0xef   : > { %600 = vmatmul.mubr.f32.gmra.mrb[22].mxu0 %v351_v14  ;;  %696 = vmatmul.mubr.f32.gmra.mrb[22].mxu1 %v383_v15  ;;  %v731_v15 = vld [vmem:[%s2366_s2 + $0x28] sm:$0xff] }
  0xf0   : > { %605 = vmatprep.mubr.f32.mxu0 %v354_v16  ;;  %701 = vmatprep.mubr.f32.mxu1 %v386_v17 }
  0xf3   : > { %606 = vmatmul.mubr.f32.gmra.mrb[24].mxu0 %v353_v18  ;;  %702 = vmatmul.mubr.f32.gmra.mrb[24].mxu1 %v385_v19  ;;  %v763_v18 = vld [vmem:[%s2366_s2 + $0x128] sm:$0xff] }
  0xf4   : > { %611 = vmatprep.mubr.f32.mxu0 %v356_v20  ;;  %707 = vmatprep.mubr.f32.mxu1 %v388_v21 }
  0xf7   : > { %612 = vmatmul.mubr.f32.gmra.mrb[26].mxu0 %v355_v22  ;;  %708 = vmatmul.mubr.f32.gmra.mrb[26].mxu1 %v387_v23 }
  0xf8   : > { %617 = vmatprep.mubr.f32.mxu0 %v358_v24  ;;  %713 = vmatprep.mubr.f32.mxu1 %v390_v25 }
  0xfb   : > { %618 = vmatmul.mubr.f32.gmra.mrb[28].mxu0 %v357_v26  ;;  %714 = vmatmul.mubr.f32.gmra.mrb[28].mxu1 %v389_v27  ;;  %v732_v26 = vld [vmem:[%s2366_s2 + $0x30] sm:$0xff] }
  0xfc   : > { %623 = vmatprep.mubr.f32.mxu0 %v360_v28  ;;  %719 = vmatprep.mubr.f32.mxu1 %v392_v29 }
  0xff   : > { %624 = vmatmul.mubr.f32.gmra.mrb[30].mxu0 %v359_v30  ;;  %720 = vmatmul.mubr.f32.gmra.mrb[30].mxu1 %v391_v31 }
 0x196   : > { %v535_v39 = vpop.f32.mrb[0].mxu0  ;;  %v631_v40 = vpop.f32.mrb[0].mxu1 }
 0x197   : > { %v536_v42 = vadd.f32 %v535_v39, %v2448_v37  ;;  %v537_v43 = vpop.f32.mrb[1].mxu0  ;;  %v632_v44 = vadd.f32 %v631_v40, %v2448_v37  ;;  %v633_v46 = vpop.f32.mrb[1].mxu1  ;;  %v765_v40 = vld [vmem:[%s2366_s2 + $0x138] sm:$0xff] }
 0x198   : > { %v538_v49 = vadd.f32 %v537_v43, %v2451_v38  ;;  %v634_v50 = vadd.f32 %v633_v46, %v2451_v38 }
 0x199   : > { %v2461_v51 = vadd.f32 %v726_v41, %v536_v42  ;;  %v2463_v52 = vadd.f32 %v758_v45, %v632_v44 }
 0x19a   : > { %v2465_v53 = vadd.f32 %v759_v47, %v634_v50  ;;  %v637_v54 = vpop.f32.mrb[2].mxu1  ;;  %v541_v55 = vpop.f32.mrb[2].mxu0  ;;  %v2467_v56 = vadd.f32 %v727_v48, %v538_v49  ;;  %v734_v48 = vld [vmem:[%s2366_s2 + $0x40] sm:$0xff] }
 0x19b   : > { %v638_v58 = vadd.f32 %v637_v54, %v2448_v37  ;;  %v639_v59 = vpop.f32.mrb[3].mxu1  ;;  %v542_v60 = vadd.f32 %v541_v55, %v2448_v37  ;;  %v543_v62 = vpop.f32.mrb[3].mxu0  ;;  %v766_v55 = vld [vmem:[%s2366_s2 + $0x140] sm:$0xff] }
 0x19c   : > { %v640_v1 = vadd.f32 %v639_v59, %v2451_v38  ;;  %v544_v2 = vadd.f32 %v543_v62, %v2451_v38  ;;  %v854_v3 = vadd.f32 %v2467_v56, %v2461_v51  ;;  %v902_v12 = vadd.f32 %v2465_v53, %v2463_v52  ;;  %v735_v59 = vld [vmem:[%s2366_s2 + $0x48] sm:$0xff] }
 0x19d   : > { %v2479_v4 = vadd.f32 %v760_v57, %v638_v58  ;;  %v2481_v5 = vadd.f32 %v728_v61, %v542_v60  ;;  %v767_v62 = vld [vmem:[%s2366_s2 + $0x148] sm:$0xff] }
 0x19e   : > { %v2483_v6 = vadd.f32 %v729_v63, %v544_v2  ;;  %v547_v7 = vpop.f32.mrb[4].mxu0  ;;  %855 = vadd.xlane.f32.xlu0 %v854_v3  ;;  %v643_v9 = vpop.f32.mrb[4].mxu1  ;;  %v2487_v11 = vadd.f32 %v761_v0, %v640_v1 }
 0x19f   : > { %v548_v13 = vadd.f32 %v547_v7, %v2448_v37  ;;  %v549_v14 = vpop.f32.mrb[5].mxu0  ;;  %v644_v16 = vadd.f32 %v643_v9, %v2448_v37  ;;  %v645_v17 = vpop.f32.mrb[5].mxu1  ;;  %v736_v9 = vld [vmem:[%s2366_s2 + $0x50] sm:$0xff] }
 0x1a0   : > { %v550_v19 = vadd.f32 %v549_v14, %v2451_v38  ;;  %v905_v20 = vadd.f32 %v2487_v11, %v2479_v4  ;;  %v646_v21 = vadd.f32 %v645_v17, %v2451_v38  ;;  %v857_v29 = vadd.f32 %v2483_v6, %v2481_v5 }
 0x1a1   : > { %v2499_v22 = vadd.f32 %v730_v8, %v548_v13  ;;  %v2501_v23 = vadd.f32 %v762_v10, %v644_v16  ;;  %v737_v16 = vld [vmem:[%s2366_s2 + $0x58] sm:$0xff] }
 0x1a2   : > { %v2503_v24 = vadd.f32 %v731_v15, %v550_v19  ;;  %906 = vadd.xlane.f32.xlu1 %v905_v20  ;;  %v553_v25 = vpop.f32.mrb[6].mxu0  ;;  %903 = vadd.xlane.f32.xlu0 %v902_v12  ;;  %v2506_v27 = vadd.f32 %v763_v18, %v646_v21  ;;  %v649_v28 = vpop.f32.mrb[6].mxu1  ;;  %v768_v18 = vld [vmem:[%s2366_s2 + $0x150] sm:$0xff]  ;;  %v769_v20 = vld [vmem:[%s2366_s2 + $0x158] sm:$0xff] }
 0x1a3   : > { %v554_v30 = vadd.f32 %v553_v25, %v2448_v37  ;;  %v555_v31 = vpop.f32.mrb[7].mxu0  ;;  %v650_v33 = vadd.f32 %v649_v28, %v2448_v37  ;;  %v651_v39 = vpop.f32.mrb[7].mxu1 }
 0x1a4   : > { %v556_v41 = vadd.f32 %v555_v31, %v2451_v38  ;;  %v860_v42 = vadd.f32 %v2503_v24, %v2499_v22  ;;  %v652_v43 = vadd.f32 %v651_v39, %v2451_v38  ;;  %v908_v45 = vadd.f32 %v2506_v27, %v2501_v23 }
 0x1a5   : > { %v2519_v44 = vadd.f32 %v732_v26, %v554_v30  ;;  %v2526_v49 = vadd.f32 %v764_v35, %v650_v33 }
 0x1a6   : > { %v2523_v46 = vadd.f32 %v733_v32, %v556_v41  ;;  %v559_v47 = vpop.f32.mrb[8].mxu0  ;;  %861 = vadd.xlane.f32.xlu1 %v860_v42  ;;  %858 = vadd.xlane.f32.xlu0 %v857_v29  ;;  %v2528_v50 = vadd.f32 %v765_v40, %v652_v43  ;;  %v655_v54 = vpop.f32.mrb[8].mxu1  ;;  %v738_v32 = vld [vmem:[%s2366_s2 + $0x60] sm:$0xff]  ;;  %v739_v43 = vld [vmem:[%s2366_s2 + $0x68] sm:$0xff] }
 0x1a7   : > { %v560_v57 = vadd.f32 %v559_v47, %v2448_v37  ;;  %v561_v58 = vpop.f32.mrb[9].mxu0  ;;  %v656_v60 = vadd.f32 %v655_v54, %v2448_v37  ;;  %v657_v61 = vpop.f32.mrb[9].mxu1  ;;  %v770_v40 = vld [vmem:[%s2366_s2 + $0x160] sm:$0xff] }
 0x1a8   : > { %v562_v63 = vadd.f32 %v561_v58, %v2451_v38  ;;  %v863_v0 = vadd.f32 %v2523_v46, %v2519_v44  ;;  %v658_v1 = vadd.f32 %v657_v61, %v2451_v38  ;;  %v911_v13 = vadd.f32 %v2528_v50, %v2526_v49 }
 0x1a9   : > { %v2539_v2 = vadd.f32 %v734_v48, %v560_v57  ;;  %v2541_v3 = vadd.f32 %v766_v55, %v656_v60  ;;  %v771_v48 = vld [vmem:[%s2366_s2 + $0x168] sm:$0xff] }
 0x1aa   : > { %v2543_v7 = vadd.f32 %v735_v59, %v562_v63  ;;  %v565_v8 = vpop.f32.mrb[10].mxu0  ;;  %864 = vadd.xlane.f32.xlu1 %v863_v0  ;;  %909 = vadd.xlane.f32.xlu0 %v908_v45  ;;  %v2546_v10 = vadd.f32 %v767_v62, %v658_v1  ;;  %v661_v12 = vpop.f32.mrb[10].mxu1  ;;  %v740_v62 = vld [vmem:[%s2366_s2 + $0x70] sm:$0xff] }
 0x1ab   : > { %v566_v14 = vadd.f32 %v565_v8, %v2448_v37  ;;  %v567_v15 = vpop.f32.mrb[11].mxu0  ;;  %v662_v17 = vadd.f32 %v661_v12, %v2448_v37  ;;  %v663_v19 = vpop.f32.mrb[11].mxu1  ;;  %v741_v12 = vld [vmem:[%s2366_s2 + $0x78] sm:$0xff] }
 0x1ac   : > { %v568_v21 = vadd.f32 %v567_v15, %v2451_v38  ;;  %v866_v25 = vadd.f32 %v2543_v7, %v2539_v2  ;;  %v664_v26 = vadd.f32 %v663_v19, %v2451_v38  ;;  %v914_v29 = vadd.f32 %v2546_v10, %v2541_v3 }
 0x1ad   : > { %v2559_v28 = vadd.f32 %v736_v9, %v566_v14  ;;  %v2566_v33 = vadd.f32 %v768_v18, %v662_v17  ;;  %v772_v14 = vld [vmem:[%s2366_s2 + $0x170] sm:$0xff] }
 0x1ae   : > { %v2563_v30 = vadd.f32 %v737_v16, %v568_v21  ;;  %v571_v31 = vpop.f32.mrb[12].mxu0  ;;  %912 = vadd.xlane.f32.xlu1 %v911_v13  ;;  %867 = vadd.xlane.f32.xlu0 %v866_v25  ;;  %v2568_v35 = vadd.f32 %v769_v20, %v664_v26  ;;  %v667_v39 = vpop.f32.mrb[12].mxu1  ;;  %v773_v16 = vld [vmem:[%s2366_s2 + $0x178] sm:$0xff] }
 0x1af   : > { %v572_v41 = vadd.f32 %v571_v31, %v2448_v37  ;;  %v573_v42 = vpop.f32.mrb[13].mxu0  ;;  %v668_v45 = vadd.f32 %v667_v39, %v2448_v37  ;;  %v669_v47 = vpop.f32.mrb[13].mxu1 }
 0x1b0   : > { %v574_v54 = vadd.f32 %v573_v42, %v2451_v38  ;;  %v869_v55 = vadd.f32 %v2563_v30, %v2559_v28  ;;  %v670_v57 = vadd.f32 %v669_v47, %v2451_v38  ;;  %v917_v1 = vadd.f32 %v2568_v35, %v2566_v33 }
 0x1b1   : > { %v2579_v58 = vadd.f32 %v738_v32, %v572_v41  ;;  %v2581_v59 = vadd.f32 %v770_v40, %v668_v45  ;;  %v774_v40 = vld [vmem:[%s2366_s2 + $0x180] sm:$0xff] }
 0x1b2   : > { %v2583_v60 = vadd.f32 %v739_v43, %v574_v54  ;;  %v577_v61 = vpop.f32.mrb[14].mxu0  ;;  %870 = vadd.xlane.f32.xlu1 %v869_v55  ;;  %915 = vadd.xlane.f32.xlu0 %v914_v29  ;;  %v2586_v63 = vadd.f32 %v771_v48, %v670_v57  ;;  %v673_v0 = vpop.f32.mrb[14].mxu1  ;;  %v742_v29 = vld [vmem:[%s2366_s2 + $0x80] sm:$0xff]  ;;  %v743_v43 = vld [vmem:[%s2366_s2 + $0x88] sm:$0xff] }
 0x1b3   : > { %v578_v8 = vadd.f32 %v577_v61, %v2448_v37  ;;  %v579_v9 = vpop.f32.mrb[15].mxu0  ;;  %v674_v13 = vadd.f32 %v673_v0, %v2448_v37  ;;  %v675_v15 = vpop.f32.mrb[15].mxu1  ;;  %v775_v48 = vld [vmem:[%s2366_s2 + $0x188] sm:$0xff] }
 0x1b4   : > { %v580_v17 = vadd.f32 %v579_v9, %v2451_v38  ;;  %v872_v18 = vadd.f32 %v2583_v60, %v2579_v58  ;;  %v676_v19 = vadd.f32 %v675_v15, %v2451_v38  ;;  %v920_v21 = vadd.f32 %v2586_v63, %v2581_v59 }
 0x1b5   : > { %v2599_v20 = vadd.f32 %v740_v62, %v578_v8  ;;  %v2606_v31 = vadd.f32 %v772_v14, %v674_v13  ;;  %v744_v8 = vld [vmem:[%s2366_s2 + $0x90] sm:$0xff] }
 0x1b6   : > { %v2603_v25 = vadd.f32 %v741_v12, %v580_v17  ;;  %v583_v26 = vpop.f32.mrb[16].mxu0  ;;  %918 = vadd.xlane.f32.xlu1 %v917_v1  ;;  %873 = vadd.xlane.f32.xlu0 %v872_v18  ;;  %v2608_v32 = vadd.f32 %v773_v16, %v676_v19  ;;  %v679_v39 = vpop.f32.mrb[16].mxu1  ;;  %v745_v16 = vld [vmem:[%s2366_s2 + $0x98] sm:$0xff]  ;;  %v776_v18 = vld [vmem:[%s2366_s2 + $0x190] sm:$0xff] }
 0x1b7   : > { %v584_v41 = vadd.f32 %v583_v26, %v2448_v37  ;;  %v585_v42 = vpop.f32.mrb[17].mxu0  ;;  %v680_v45 = vadd.f32 %v679_v39, %v2448_v37  ;;  %v681_v47 = vpop.f32.mrb[17].mxu1  ;;  %v777_v26 = vld [vmem:[%s2366_s2 + $0x198] sm:$0xff] }
 0x1b8   : > { %v586_v54 = vadd.f32 %v585_v42, %v2451_v38  ;;  %v875_v55 = vadd.f32 %v2603_v25, %v2599_v20  ;;  %v682_v57 = vadd.f32 %v681_v47, %v2451_v38  ;;  %v923_v13 = vadd.f32 %v2608_v32, %v2606_v31 }
 0x1b9   : > { %v2619_v61 = vadd.f32 %v742_v29, %v584_v41  ;;  %v2621_v62 = vadd.f32 %v774_v40, %v680_v45  ;;  %v746_v45 = vld [vmem:[%s2366_s2 + $0xa0] sm:$0xff] }
 0x1ba   : > { %v2623_v0 = vadd.f32 %v743_v43, %v586_v54  ;;  %v589_v1 = vpop.f32.mrb[18].mxu0  ;;  %876 = vadd.xlane.f32.xlu1 %v875_v55  ;;  %921 = vadd.xlane.f32.xlu0 %v920_v21  ;;  %v2626_v9 = vadd.f32 %v775_v48, %v682_v57  ;;  %v685_v12 = vpop.f32.mrb[18].mxu1  ;;  %v778_v55 = vld [vmem:[%s2366_s2 + $0x1a0] sm:$0xff] }
 0x1bb   : > { %v590_v14 = vadd.f32 %v589_v1, %v2448_v37  ;;  %v591_v15 = vpop.f32.mrb[19].mxu0  ;;  %v686_v17 = vadd.f32 %v685_v12, %v2448_v37  ;;  %v687_v19 = vpop.f32.mrb[19].mxu1 }
 0x1bc   : > { %v592_v29 = vadd.f32 %v591_v15, %v2451_v38  ;;  %v878_v21 = vadd.f32 %v2623_v0, %v2619_v61  ;;  %v688_v39 = vadd.f32 %v687_v19, %v2451_v38  ;;  %v926_v41 = vadd.f32 %v2626_v9, %v2621_v62  ;;  %v779_v15 = vld [vmem:[%s2366_s2 + $0x1a8] sm:$0xff] }
 0x1bd   : > { %v2639_v40 = vadd.f32 %v744_v8, %v590_v14  ;;  %v2646_v47 = vadd.f32 %v776_v18, %v686_v17  ;;  %v747_v8 = vld [vmem:[%s2366_s2 + $0xa8] sm:$0xff] }
 0x1be   : > { %v2643_v42 = vadd.f32 %v745_v16, %v592_v29  ;;  %v595_v43 = vpop.f32.mrb[20].mxu0  ;;  %924 = vadd.xlane.f32.xlu1 %v923_v13  ;;  %879 = vadd.xlane.f32.xlu0 %v878_v21  ;;  %v2648_v48 = vadd.f32 %v777_v26, %v688_v39  ;;  %v691_v54 = vpop.f32.mrb[20].mxu1  ;;  %v748_v21 = vld [vmem:[%s2366_s2 + $0xb0] sm:$0xff] }
 0x1bf   : > { %3503 = vst [vmem:[#allocation18_spill] sm:$0xff] %v2646_v47  ;;  %v596_v57 = vadd.f32 %v595_v43, %v2448_v37  ;;  %v597_v1 = vpop.f32.mrb[21].mxu0  ;;  %v692_v12 = vadd.f32 %v691_v54, %v2448_v37  ;;  %v693_v14 = vpop.f32.mrb[21].mxu1 }
 0x1c0   : > { %3504 = vst [vmem:[#allocation19_spill] sm:$0xff] %v2648_v48  ;;  %v598_v16 = vadd.f32 %v597_v1, %v2451_v38  ;;  %v881_v13 = vadd.f32 %v2643_v42, %v2639_v40  ;;  %v694_v17 = vadd.f32 %v693_v14, %v2451_v38  ;;  %v929_v54 = vadd.f32 %v2648_v48, %v2646_v47  ;;  %v781_v14 = vld [vmem:[%s2366_s2 + $0x1b8] sm:$0xff]  ;;  %v782_v47 = vld [vmem:[%s2366_s2 + $0x1c0] sm:$0xff] }
 0x1c1   : > { %v2659_v18 = vadd.f32 %v746_v45, %v596_v57  ;;  %v2661_v19 = vadd.f32 %v778_v55, %v692_v12  ;;  %v749_v57 = vld [vmem:[%s2366_s2 + $0xb8] sm:$0xff]  ;;  %v780_v12 = vld [vmem:[%s2366_s2 + $0x1b0] sm:$0xff] }
 0x1c2   : > { %v2663_v26 = vadd.f32 %v747_v8, %v598_v16  ;;  %v601_v29 = vpop.f32.mrb[22].mxu0  ;;  %882 = vadd.xlane.f32.xlu1 %v881_v13  ;;  %927 = vadd.xlane.f32.xlu0 %v926_v41  ;;  %v2666_v39 = vadd.f32 %v779_v15, %v694_v17  ;;  %v697_v43 = vpop.f32.mrb[22].mxu1 }
 0x1c3   : > { %3505 = vst [vmem:[#allocation20_spill] sm:$0xff] %v2661_v19  ;;  %v602_v1 = vadd.f32 %v601_v29, %v2448_v37  ;;  %v603_v45 = vpop.f32.mrb[23].mxu0  ;;  %v698_v55 = vadd.f32 %v697_v43, %v2448_v37  ;;  %v699_v8 = vpop.f32.mrb[23].mxu1 }
 0x1c4   : > { %3506 = vst [vmem:[#allocation21_spill] sm:$0xff] %v2663_v26  ;;  %3507 = vst [vmem:[#allocation22_spill] sm:$0xff] %v2666_v39  ;;  %v604_v16 = vadd.f32 %v603_v45, %v2451_v38  ;;  %v884_v41 = vadd.f32 %v2663_v26, %v2659_v18  ;;  %v700_v15 = vadd.f32 %v699_v8, %v2451_v38  ;;  %v751_v8 = vld [vmem:[%s2366_s2 + $0xc8] sm:$0xff] }
 0x1c5   : > { %v2679_v13 = vadd.f32 %v748_v21, %v602_v1  ;;  %v932_v17 = vadd.f32 %v2666_v39, %v2661_v19  ;;  %v2686_v34 = vadd.f32 %v780_v12, %v698_v55 }
 0x1c6   : > { %v2683_v29 = vadd.f32 %v749_v57, %v604_v16  ;;  %v607_v43 = vpop.f32.mrb[24].mxu0  ;;  %930 = vadd.xlane.f32.xlu1 %v929_v54  ;;  %885 = vadd.xlane.f32.xlu0 %v884_v41  ;;  %v2688_v45 = vadd.f32 %v781_v14, %v700_v15  ;;  %v703_v48 = vpop.f32.mrb[24].mxu1  ;;  %v783_v57 = vld [vmem:[%s2366_s2 + $0x1c8] sm:$0xff] }
 0x1c7   : > { %3508 = vst [vmem:[#allocation23_spill] sm:$0xff] %v2679_v13  ;;  %3510 = vst [vmem:[#allocation25_spill] sm:$0xff] %v2686_v34  ;;  %v608_v21 = vadd.f32 %v607_v43, %v2448_v37  ;;  %v609_v1 = vpop.f32.mrb[25].mxu0  ;;  %v704_v26 = vadd.f32 %v703_v48, %v2448_v37  ;;  %v705_v39 = vpop.f32.mrb[25].mxu1  ;;  %v752_v48 = vld [vmem:[%s2366_s2 + $0xd0] sm:$0xff] }
 0x1c8   : > { %3509 = vst [vmem:[#allocation24_spill] sm:$0xff] %v2683_v29  ;;  %3511 = vst [vmem:[#allocation26_spill] sm:$0xff] %v2688_v45  ;;  %v610_v16 = vadd.f32 %v609_v1, %v2451_v38  ;;  %v887_v54 = vadd.f32 %v2683_v29, %v2679_v13  ;;  %v706_v55 = vadd.f32 %v705_v39, %v2451_v38 }
 0x1c9   : > { %v2699_v12 = vadd.f32 %v750_v36, %v608_v21  ;;  %v2701_v14 = vadd.f32 %v782_v47, %v704_v26  ;;  %v935_v19 = vadd.f32 %v2688_v45, %v2686_v34  ;;  %v753_v21 = vld [vmem:[%s2366_s2 + $0xd8] sm:$0xff]  ;;  %v784_v26 = vld [vmem:[%s2366_s2 + $0x1d0] sm:$0xff]  ;;  %v754_v34 = vld [vmem:[%s2366_s2 + $0xe0] sm:$0xff] }
 0x1ca   : > { %v2703_v41 = vadd.f32 %v751_v8, %v610_v16  ;;  %v613_v15 = vpop.f32.mrb[26].mxu0  ;;  %888 = vadd.xlane.f32.xlu1 %v887_v54  ;;  %933 = vadd.xlane.f32.xlu0 %v932_v17  ;;  %v2706_v43 = vadd.f32 %v783_v57, %v706_v55  ;;  %v709_v1 = vpop.f32.mrb[26].mxu1  ;;  %v785_v16 = vld [vmem:[%s2366_s2 + $0x1d8] sm:$0xff] }
 0x1cb   : > { %3512 = vst [vmem:[#allocation27_spill] sm:$0xff] %v2699_v12  ;;  %v614_v39 = vadd.f32 %v613_v15, %v2448_v37  ;;  %v615_v36 = vpop.f32.mrb[27].mxu0  ;;  %v710_v47 = vadd.f32 %v709_v1, %v2448_v37  ;;  %v711_v8 = vpop.f32.mrb[27].mxu1 }
 0x1cc   : > { %3513 = vst [vmem:[#allocation28_spill] sm:$0xff] %v2703_v41  ;;  %3514 = vst [vmem:[#allocation29_spill] sm:$0xff] %v2706_v43  ;;  %v616_v54 = vadd.f32 %v615_v36, %v2451_v38  ;;  %v890_v17 = vadd.f32 %v2703_v41, %v2699_v12  ;;  %v712_v57 = vadd.f32 %v711_v8, %v2451_v38  ;;  %v786_v12 = vld [vmem:[%s2366_s2 + $0x1e0] sm:$0xff]  ;;  %v755_v8 = vld [vmem:[%s2366_s2 + $0xe8] sm:$0xff] }
 0x1cd   : > { %v2719_v55 = vadd.f32 %v752_v48, %v614_v39  ;;  %v938_v15 = vadd.f32 %v2706_v43, %v2701_v14  ;;  %v2726_v29 = vadd.f32 %v784_v26, %v710_v47 }
 0x1ce   : > { %v2723_v45 = vadd.f32 %v753_v21, %v616_v54  ;;  %v619_v1 = vpop.f32.mrb[28].mxu0  ;;  %936 = vadd.xlane.f32.xlu1 %v935_v19  ;;  %891 = vadd.xlane.f32.xlu0 %v890_v17  ;;  %v2728_v36 = vadd.f32 %v785_v16, %v712_v57  ;;  %v715_v41 = vpop.f32.mrb[28].mxu1  ;;  %v787_v21 = vld [vmem:[%s2366_s2 + $0x1e8] sm:$0xff] }
 0x1cf   : > { %3515 = vst [vmem:[#allocation30_spill] sm:$0xff] %v2719_v55  ;;  %v620_v48 = vadd.f32 %v619_v1, %v2448_v37  ;;  %v621_v39 = vpop.f32.mrb[29].mxu0  ;;  %v716_v13 = vadd.f32 %v715_v41, %v2448_v37  ;;  %v717_v43 = vpop.f32.mrb[29].mxu1  ;;  %v756_v41 = vld [vmem:[%s2366_s2 + $0xf0] sm:$0xff] }
 0x1d0   : > { %3516 = vst [vmem:[#allocation31_spill] sm:$0xff] %v2723_v45  ;;  %3517 = vst [vmem:[#allocation32_spill] sm:$0xff] %v2728_v36  ;;  %v622_v54 = vadd.f32 %v621_v39, %v2451_v38  ;;  %v893_v19 = vadd.f32 %v2723_v45, %v2719_v55  ;;  %v718_v47 = vadd.f32 %v717_v43, %v2451_v38 }
 0x1d1   : > { %v2739_v26 = vadd.f32 %v754_v34, %v620_v48  ;;  %v2741_v16 = vadd.f32 %v786_v12, %v716_v13  ;;  %v941_v45 = vadd.f32 %v2728_v36, %v2726_v29  ;;  %v757_v34 = vld [vmem:[%s2366_s2 + $0xf8] sm:$0xff]  ;;  %v788_v13 = vld [vmem:[%s2366_s2 + $0x1f0] sm:$0xff] }
 0x1d2   : > { %v2743_v17 = vadd.f32 %v755_v8, %v622_v54  ;;  %v625_v57 = vpop.f32.mrb[30].mxu0  ;;  %894 = vadd.xlane.f32.xlu1 %v893_v19  ;;  %939 = vadd.xlane.f32.xlu0 %v938_v15  ;;  %v2746_v1 = vadd.f32 %v787_v21, %v718_v47  ;;  %v721_v39 = vpop.f32.mrb[30].mxu1  ;;  %v789_v8 = vld [vmem:[%s2366_s2 + $0x1f8] sm:$0xff] }
 0x1d3   : > { %v626_v55 = vadd.f32 %v625_v57, %v2448_v37  ;;  %v627_v43 = vpop.f32.mrb[31].mxu0  ;;  %v722_v48 = vadd.f32 %v721_v39, %v2448_v37  ;;  %v723_v12 = vpop.f32.mrb[31].mxu1 }
 0x1d4   : > { %v628_v54 = vadd.f32 %v627_v43, %v2451_v38  ;;  %v896_v15 = vadd.f32 %v2743_v17, %v2739_v26  ;;  %v724_v21 = vadd.f32 %v723_v12, %v2451_v38  ;;  %v944_v47 = vadd.f32 %v2746_v1, %v2741_v16 }
 0x1d5   : > { %v2759_v19 = vadd.f32 %v756_v41, %v626_v55  ;;  %v2765_v36 = vadd.f32 %v788_v13, %v722_v48 }
 0x1d6   : > { %v2763_v57 = vadd.f32 %v757_v34, %v628_v54  ;;  %942 = vadd.xlane.f32.xlu1 %v941_v45  ;;  %897 = vadd.xlane.f32.xlu0 %v896_v15  ;;  %v2767_v37 = vadd.f32 %v789_v8, %v724_v21 }
 0x1d8   : > { %v899_v39 = vadd.f32 %v2763_v57, %v2759_v19  ;;  %v947_v38 = vadd.f32 %v2767_v37, %v2765_v36 }
 0x1da   : > { %900 = vadd.xlane.f32.xlu1 %v899_v39  ;;  %945 = vadd.xlane.f32.xlu0 %v944_v47 }
 0x1de   : > { %948 = vadd.xlane.f32.xlu1 %v947_v38 }
 0x22b   : > { %v856_v55 = vpop.xlane.xlu0 %855 }
 0x22c   : > { %v951_v41 = vmul.f32 0.00390625, %v856_v55 }
 0x22e   : > { %v2774_v43 = vsub.f32 %v2461_v51, %v951_v41  ;;  %v2777_v34 = vsub.f32 %v2467_v56, %v951_v41 }
 0x22f   : > { %v907_v45 = vpop.xlane.xlu1 %906  ;;  %v904_v48 = vpop.xlane.xlu0 %903 }
 0x230   : > { %v967_v13 = vmul.f32 0.00390625, %v904_v48  ;;  %v1047_v12 = vmul.f32 %v2774_v43, %v2774_v43  ;;  %v1048_v8 = vmul.f32 %v2777_v34, %v2777_v34  ;;  %v968_v54 = vmul.f32 0.00390625, %v907_v45 }
 0x232   : > { %v2784_v15 = vsub.f32 %v2463_v52, %v967_v13  ;;  %v2787_v21 = vsub.f32 %v2465_v53, %v967_v13  ;;  %v1111_v56 = vadd.f32 %v1048_v8, %v1047_v12  ;;  %v2794_v48 = vsub.f32 %v2479_v4, %v968_v54 }
 0x233   : > { %v862_v51 = vpop.xlane.xlu1 %861  ;;  %v859_v47 = vpop.xlane.xlu0 %858  ;;  %v2797_v52 = vsub.f32 %v2487_v11, %v968_v54 }
 0x234   : > { %3518 = vst [vmem:[#allocation33_spill] sm:$0xff] %v2787_v21  ;;  %v953_v39 = vmul.f32 0.00390625, %v862_v51  ;;  %v952_v38 = vmul.f32 0.00390625, %v859_v47  ;;  %v1079_v55 = vmul.f32 %v2784_v15, %v2784_v15  ;;  %v1080_v41 = vmul.f32 %v2787_v21, %v2787_v21  ;;  %3519 = vst [vmem:[#allocation34_spill] sm:$0xff] %v2794_v48  ;;  %1112 = vadd.xlane.f32.xlu0 %v1111_v56 }
 0x236   : > { %v2800_v53 = vsub.f32 %v2499_v22, %v953_v39  ;;  %v2803_v45 = vsub.f32 %v2503_v24, %v953_v39  ;;  %v2806_v13 = vsub.f32 %v2481_v5, %v952_v38  ;;  %v2809_v12 = vsub.f32 %v2483_v6, %v952_v38 }
 0x237   : > { %v865_v8 = vpop.xlane.xlu1 %864  ;;  %v910_v51 = vpop.xlane.xlu0 %909  ;;  %v1159_v4 = vadd.f32 %v1080_v41, %v1079_v55  ;;  %v1081_v6 = vmul.f32 %v2794_v48, %v2794_v48  ;;  %v1082_v38 = vmul.f32 %v2797_v52, %v2797_v52 }
 0x238   : > { %3520 = vst [vmem:[#allocation35_spill] sm:$0xff] %v2803_v45  ;;  %v954_v47 = vmul.f32 0.00390625, %v865_v8  ;;  %v969_v21 = vmul.f32 0.00390625, %v910_v51  ;;  %v1051_v11 = vmul.f32 %v2800_v53, %v2800_v53  ;;  %v1052_v22 = vmul.f32 %v2803_v45, %v2803_v45 }
 0x239   : > { %1160 = vadd.xlane.f32.xlu0 %v1159_v4  ;;  %v1049_v24 = vmul.f32 %v2806_v13, %v2806_v13  ;;  %v1050_v5 = vmul.f32 %v2809_v12, %v2809_v12 }
 0x23a   : > { %v2822_v54 = vsub.f32 %v2519_v44, %v954_v47  ;;  %v2825_v56 = vsub.f32 %v2501_v23, %v969_v21  ;;  %v2828_v39 = vsub.f32 %v2506_v27, %v969_v21  ;;  %v2833_v55 = vsub.f32 %v2523_v46, %v954_v47 }
 0x23b   : > { %v913_v41 = vpop.xlane.xlu1 %912  ;;  %v868_v8 = vpop.xlane.xlu0 %867  ;;  %v1117_v51 = vadd.f32 %v1052_v22, %v1051_v11  ;;  %v1114_v4 = vadd.f32 %v1050_v5, %v1049_v24  ;;  %v1162_v21 = vadd.f32 %v1082_v38, %v1081_v6 }
 0x23c   : > { %v970_v48 = vmul.f32 0.00390625, %v913_v41  ;;  %v955_v45 = vmul.f32 0.00390625, %v868_v8  ;;  %v1083_v44 = vmul.f32 %v2825_v56, %v2825_v56  ;;  %v1084_v23 = vmul.f32 %v2828_v39, %v2828_v39 }
 0x23d   : > { %1118 = vadd.xlane.f32.xlu0 %v1117_v51  ;;  %1115 = vadd.xlane.f32.xlu1 %v1114_v4  ;;  %v1053_v47 = vmul.f32 %v2822_v54, %v2822_v54 }
 0x23e   : > { %v2840_v27 = vsub.f32 %v2539_v2, %v955_v45  ;;  %v2843_v46 = vsub.f32 %v2543_v7, %v955_v45  ;;  %v2848_v11 = vsub.f32 %v2526_v49, %v970_v48  ;;  %v2851_v22 = vsub.f32 %v2528_v50, %v970_v48 }
 0x23f   : > { %v871_v24 = vpop.xlane.xlu1 %870  ;;  %v916_v5 = vpop.xlane.xlu0 %915  ;;  %v1165_v41 = vadd.f32 %v1084_v23, %v1083_v44  ;;  %v1054_v2 = vmul.f32 %v2833_v55, %v2833_v55 }
 0x240   : > { %v956_v8 = vmul.f32 0.00390625, %v871_v24  ;;  %v971_v51 = vmul.f32 0.00390625, %v916_v5  ;;  %v1055_v7 = vmul.f32 %v2840_v27, %v2840_v27  ;;  %v1056_v45 = vmul.f32 %v2843_v46, %v2843_v46 }
 0x241   : > { %1163 = vadd.xlane.f32.xlu1 %v1162_v21  ;;  %1166 = vadd.xlane.f32.xlu0 %v1165_v41  ;;  %v1120_v44 = vadd.f32 %v1054_v2, %v1053_v47  ;;  %v1085_v21 = vmul.f32 %v2848_v11, %v2848_v11 }
 0x242   : > { %v2860_v49 = vsub.f32 %v2559_v28, %v956_v8  ;;  %v2863_v50 = vsub.f32 %v2563_v30, %v956_v8  ;;  %v2866_v48 = vsub.f32 %v2541_v3, %v971_v51  ;;  %v2869_v6 = vsub.f32 %v2546_v10, %v971_v51 }
 0x243   : > { %v919_v38 = vpop.xlane.xlu1 %918  ;;  %v874_v4 = vpop.xlane.xlu0 %873  ;;  %v1123_v23 = vadd.f32 %v1056_v45, %v1055_v7  ;;  %v1086_v28 = vmul.f32 %v2851_v22, %v2851_v22 }
 0x244   : > { %v972_v24 = vmul.f32 0.00390625, %v919_v38  ;;  %v957_v5 = vmul.f32 0.00390625, %v874_v4  ;;  %v1087_v30 = vmul.f32 %v2866_v48, %v2866_v48  ;;  %v1088_v3 = vmul.f32 %v2869_v6, %v2869_v6 }
 0x245   : > { %1121 = vadd.xlane.f32.xlu1 %v1120_v44  ;;  %1124 = vadd.xlane.f32.xlu0 %v1123_v23  ;;  %v1057_v10 = vmul.f32 %v2860_v49, %v2860_v49  ;;  %v1058_v8 = vmul.f32 %v2863_v50, %v2863_v50  ;;  %v1168_v38 = vadd.f32 %v1086_v28, %v1085_v21 }
 0x246   : > { %v2882_v47 = vsub.f32 %v2566_v33, %v972_v24  ;;  %v2885_v41 = vsub.f32 %v2579_v58, %v957_v5  ;;  %v2888_v2 = vsub.f32 %v2583_v60, %v957_v5  ;;  %v2893_v51 = vsub.f32 %v2568_v35, %v972_v24 }
 0x247   : > { %v877_v7 = vpop.xlane.xlu1 %876  ;;  %v922_v45 = vpop.xlane.xlu0 %921  ;;  %v1171_v4 = vadd.f32 %v1088_v3, %v1087_v30  ;;  %v1126_v24 = vadd.f32 %v1058_v8, %v1057_v10 }
 0x248   : > { %v958_v44 = vmul.f32 0.00390625, %v877_v7  ;;  %v973_v23 = vmul.f32 0.00390625, %v922_v45  ;;  %v1059_v33 = vmul.f32 %v2885_v41, %v2885_v41  ;;  %v1060_v58 = vmul.f32 %v2888_v2, %v2888_v2 }
 0x249   : > { %1169 = vadd.xlane.f32.xlu1 %v1168_v38  ;;  %1172 = vadd.xlane.f32.xlu0 %v1171_v4  ;;  %v1089_v21 = vmul.f32 %v2882_v47, %v2882_v47 }
 0x24a   : > { %v2900_v60 = vsub.f32 %v2581_v59, %v973_v23  ;;  %v2903_v35 = vsub.f32 %v2586_v63, %v973_v23  ;;  %v2908_v28 = vsub.f32 %v2599_v20, %v958_v44  ;;  %v2911_v5 = vsub.f32 %v2603_v25, %v958_v44 }
 0x24b   : > { %v925_v30 = vpop.xlane.xlu1 %924  ;;  %v880_v3 = vpop.xlane.xlu0 %879  ;;  %v1129_v7 = vadd.f32 %v1060_v58, %v1059_v33  ;;  %v1090_v59 = vmul.f32 %v2893_v51, %v2893_v51 }
 0x24c   : > { %v974_v45 = vmul.f32 0.00390625, %v925_v30  ;;  %v959_v38 = vmul.f32 0.00390625, %v880_v3  ;;  %v1091_v63 = vmul.f32 %v2900_v60, %v2900_v60  ;;  %v1092_v10 = vmul.f32 %v2903_v35, %v2903_v35 }
 0x24d   : > { %1127 = vadd.xlane.f32.xlu1 %v1126_v24  ;;  %1130 = vadd.xlane.f32.xlu0 %v1129_v7  ;;  %v1174_v33 = vadd.f32 %v1090_v59, %v1089_v21  ;;  %v1061_v24 = vmul.f32 %v2908_v28, %v2908_v28 }
 0x24e   : > { %v2920_v20 = vsub.f32 %v2606_v31, %v974_v45  ;;  %v2923_v25 = vsub.f32 %v2608_v32, %v974_v45  ;;  %v2926_v8 = vsub.f32 %v2619_v61, %v959_v38  ;;  %v2929_v4 = vsub.f32 %v2623_v0, %v959_v38 }
 0x24f   : > { %v883_v44 = vpop.xlane.xlu1 %882  ;;  %v928_v23 = vpop.xlane.xlu0 %927  ;;  %v1177_v58 = vadd.f32 %v1092_v10, %v1091_v63  ;;  %v1062_v31 = vmul.f32 %v2911_v5, %v2911_v5 }
 0x250   : > { %v960_v30 = vmul.f32 0.00390625, %v883_v44  ;;  %v975_v3 = vmul.f32 0.00390625, %v928_v23  ;;  %v1063_v32 = vmul.f32 %v2926_v8, %v2926_v8  ;;  %v1064_v61 = vmul.f32 %v2929_v4, %v2929_v4 }
 0x251   : > { %1175 = vadd.xlane.f32.xlu1 %v1174_v33  ;;  %1178 = vadd.xlane.f32.xlu0 %v1177_v58  ;;  %v1093_v0 = vmul.f32 %v2920_v20, %v2920_v20  ;;  %v1094_v45 = vmul.f32 %v2923_v25, %v2923_v25  ;;  %v1132_v44 = vadd.f32 %v1062_v31, %v1061_v24  ;;  %v3528_v31 = vld [vmem:[#allocation18_spill] sm:$0xff] }
 0x252   : > { %v2942_v21 = vsub.f32 %v2639_v40, %v960_v30  ;;  %v2945_v7 = vsub.f32 %v2621_v62, %v975_v3  ;;  %v2948_v59 = vsub.f32 %v2626_v9, %v975_v3  ;;  %v2953_v38 = vsub.f32 %v2643_v42, %v960_v30  ;;  %v3526_v3 = vld [vmem:[#allocation21_spill] sm:$0xff] }
 0x253   : > { %v931_v63 = vpop.xlane.xlu1 %930  ;;  %v886_v10 = vpop.xlane.xlu0 %885  ;;  %v1135_v23 = vadd.f32 %v1064_v61, %v1063_v32  ;;  %v1180_v30 = vadd.f32 %v1094_v45, %v1093_v0  ;;  %v3530_v61 = vld [vmem:[#allocation19_spill] sm:$0xff] }
 0x254   : > { %3521 = vst [vmem:[#allocation36_spill] sm:$0xff] %v2942_v21  ;;  %3522 = vst [vmem:[#allocation37_spill] sm:$0xff] %v2945_v7  ;;  %v976_v33 = vmul.f32 0.00390625, %v931_v63  ;;  %v961_v58 = vmul.f32 0.00390625, %v886_v10  ;;  %v1095_v40 = vmul.f32 %v2945_v7, %v2945_v7  ;;  %v1096_v62 = vmul.f32 %v2948_v59, %v2948_v59 }
 0x255   : > { %3523 = vst [vmem:[#allocation38_spill] sm:$0xff] %v2948_v59  ;;  %3524 = vst [vmem:[#allocation39_spill] sm:$0xff] %v2953_v38  ;;  %1133 = vadd.xlane.f32.xlu1 %v1132_v44  ;;  %1136 = vadd.xlane.f32.xlu0 %v1135_v23  ;;  %v1065_v24 = vmul.f32 %v2942_v21, %v2942_v21 }
 0x256   : > { %v2960_v9 = vsub.f32 %v2659_v18, %v961_v58  ;;  %v2963_v42 = vsub.f32 %v3526_v3, %v961_v58  ;;  %v2968_v32 = vsub.f32 %v3528_v31, %v976_v33  ;;  %v2971_v63 = vsub.f32 %v3530_v61, %v976_v33  ;;  %v3532_v58 = vld [vmem:[#allocation23_spill] sm:$0xff]  ;;  %v3534_v33 = vld [vmem:[#allocation24_spill] sm:$0xff]  ;;  %v3537_v61 = vld [vmem:[#allocation22_spill] sm:$0xff] }
 0x257   : > { %v889_v10 = vpop.xlane.xlu1 %888  ;;  %v934_v59 = vpop.xlane.xlu0 %933  ;;  %v1183_v44 = vadd.f32 %v1096_v62, %v1095_v40  ;;  %v1066_v18 = vmul.f32 %v2953_v38, %v2953_v38  ;;  %v3535_v40 = vld [vmem:[#allocation20_spill] sm:$0xff] }
 0x258   : > { %3525 = vst [vmem:[#allocation40_spill] sm:$0xff] %v2960_v9  ;;  %3527 = vst [vmem:[#allocation21_spill] sm:$0xff] %v2963_v42  ;;  %v962_v23 = vmul.f32 0.00390625, %v889_v10  ;;  %v977_v7 = vmul.f32 0.00390625, %v934_v59  ;;  %v1067_v0 = vmul.f32 %v2960_v9, %v2960_v9  ;;  %v1068_v45 = vmul.f32 %v2963_v42, %v2963_v42 }
 0x259   : > { %3529 = vst [vmem:[#allocation18_spill] sm:$0xff] %v2968_v32  ;;  %3531 = vst [vmem:[#allocation19_spill] sm:$0xff] %v2971_v63  ;;  %1181 = vadd.xlane.f32.xlu1 %v1180_v30  ;;  %1184 = vadd.xlane.f32.xlu0 %v1183_v44  ;;  %v1138_v9 = vadd.f32 %v1066_v18, %v1065_v24  ;;  %v1097_v30 = vmul.f32 %v2968_v32, %v2968_v32  ;;  %v3539_v24 = vld [vmem:[#allocation25_spill] sm:$0xff] }
 0x25a   : > { %v2980_v3 = vsub.f32 %v3532_v58, %v962_v23  ;;  %v2983_v31 = vsub.f32 %v3534_v33, %v962_v23  ;;  %v2986_v62 = vsub.f32 %v3535_v40, %v977_v7  ;;  %v2989_v10 = vsub.f32 %v3537_v61, %v977_v7  ;;  %v3542_v40 = vld [vmem:[#allocation28_spill] sm:$0xff] }
 0x25b   : > { %v937_v59 = vpop.xlane.xlu1 %936  ;;  %v892_v38 = vpop.xlane.xlu0 %891  ;;  %v1141_v21 = vadd.f32 %v1068_v45, %v1067_v0  ;;  %v1098_v44 = vmul.f32 %v2971_v63, %v2971_v63  ;;  %v3540_v0 = vld [vmem:[#allocation27_spill] sm:$0xff] }
 0x25c   : > { %3533 = vst [vmem:[#allocation23_spill] sm:$0xff] %v2980_v3  ;;  %3536 = vst [vmem:[#allocation24_spill] sm:$0xff] %v2986_v62  ;;  %v978_v58 = vmul.f32 0.00390625, %v937_v59  ;;  %v963_v42 = vmul.f32 0.00390625, %v892_v38  ;;  %v1099_v23 = vmul.f32 %v2986_v62, %v2986_v62  ;;  %v1100_v33 = vmul.f32 %v2989_v10, %v2989_v10  ;;  %v3544_v59 = vld [vmem:[#allocation26_spill] sm:$0xff] }
 0x25d   : > { %3538 = vst [vmem:[#allocation20_spill] sm:$0xff] %v2989_v10  ;;  %1139 = vadd.xlane.f32.xlu1 %v1138_v9  ;;  %1142 = vadd.xlane.f32.xlu0 %v1141_v21  ;;  %v1069_v7 = vmul.f32 %v2980_v3, %v2980_v3  ;;  %v1070_v38 = vmul.f32 %v2983_v31, %v2983_v31 }
 0x25e   : > { %v3002_v18 = vsub.f32 %v3539_v24, %v978_v58  ;;  %v3005_v45 = vsub.f32 %v3540_v0, %v963_v42  ;;  %v3008_v61 = vsub.f32 %v3542_v40, %v963_v42  ;;  %v3013_v62 = vsub.f32 %v3544_v59, %v978_v58  ;;  %v3545_v40 = vld [vmem:[#allocation29_spill] sm:$0xff] }
 0x25f   : > { %v895_v9 = vpop.xlane.xlu1 %894  ;;  %v940_v21 = vpop.xlane.xlu0 %939  ;;  %v1186_v10 = vadd.f32 %v1098_v44, %v1097_v30  ;;  %v1189_v63 = vadd.f32 %v1100_v33, %v1099_v23  ;;  %v1144_v59 = vadd.f32 %v1070_v38, %v1069_v7  ;;  %v3547_v44 = vld [vmem:[#allocation30_spill] sm:$0xff]  ;;  %v3548_v33 = vld [vmem:[#allocation31_spill] sm:$0xff] }
 0x260   : > { %3541 = vst [vmem:[#allocation22_spill] sm:$0xff] %v3005_v45  ;;  %3543 = vst [vmem:[#allocation25_spill] sm:$0xff] %v3008_v61  ;;  %v964_v3 = vmul.f32 0.00390625, %v895_v9  ;;  %v979_v32 = vmul.f32 0.00390625, %v940_v21  ;;  %v1071_v24 = vmul.f32 %v3005_v45, %v3005_v45  ;;  %v1072_v0 = vmul.f32 %v3008_v61, %v3008_v61 }
 0x261   : > { %1187 = vadd.xlane.f32.xlu1 %v1186_v10  ;;  %1190 = vadd.xlane.f32.xlu0 %v1189_v63  ;;  %v1101_v30 = vmul.f32 %v3002_v18, %v3002_v18 }
 0x262   : > { %v3020_v42 = vsub.f32 %v2701_v14, %v979_v32  ;;  %v3023_v58 = vsub.f32 %v3545_v40, %v979_v32  ;;  %v3028_v23 = vsub.f32 %v3547_v44, %v964_v3  ;;  %v3031_v9 = vsub.f32 %v3548_v33, %v964_v3  ;;  %v3549_v3 = vld [vmem:[#allocation32_spill] sm:$0xff] }
 0x263   : > { %v943_v21 = vpop.xlane.xlu1 %942  ;;  %v898_v61 = vpop.xlane.xlu0 %897  ;;  %v1147_v10 = vadd.f32 %v1072_v0, %v1071_v24  ;;  %v1102_v14 = vmul.f32 %v3013_v62, %v3013_v62 }
 0x264   : > { %3546 = vst [vmem:[#allocation27_spill] sm:$0xff] %v3023_v58  ;;  %v980_v63 = vmul.f32 0.00390625, %v943_v21  ;;  %v965_v45 = vmul.f32 0.00390625, %v898_v61  ;;  %v1103_v32 = vmul.f32 %v3020_v42, %v3020_v42  ;;  %v1104_v7 = vmul.f32 %v3023_v58, %v3023_v58 }
 0x265   : > { %1145 = vadd.xlane.f32.xlu1 %v1144_v59  ;;  %1148 = vadd.xlane.f32.xlu0 %v1147_v10  ;;  %v1192_v33 = vadd.f32 %v1102_v14, %v1101_v30  ;;  %v1073_v59 = vmul.f32 %v3028_v23, %v3028_v23 }
 0x266   : > { %v3040_v38 = vsub.f32 %v2726_v29, %v980_v63  ;;  %v3043_v40 = vsub.f32 %v3549_v3, %v980_v63  ;;  %v3046_v24 = vsub.f32 %v2739_v26, %v965_v45  ;;  %v3049_v0 = vsub.f32 %v2743_v17, %v965_v45 }
 0x267   : > { %v901_v61 = vpop.xlane.xlu1 %900  ;;  %v946_v44 = vpop.xlane.xlu0 %945  ;;  %v1195_v21 = vadd.f32 %v1104_v7, %v1103_v32  ;;  %v1074_v29 = vmul.f32 %v3031_v9, %v3031_v9 }
 0x268   : > { %v966_v10 = vmul.f32 0.00390625, %v901_v61  ;;  %v981_v58 = vmul.f32 0.00390625, %v946_v44  ;;  %v1075_v63 = vmul.f32 %v3046_v24, %v3046_v24  ;;  %v1076_v26 = vmul.f32 %v3049_v0, %v3049_v0 }
 0x269   : > { %1193 = vadd.xlane.f32.xlu1 %v1192_v33  ;;  %1196 = vadd.xlane.f32.xlu0 %v1195_v21  ;;  %v1105_v30 = vmul.f32 %v3040_v38, %v3040_v38  ;;  %v1106_v14 = vmul.f32 %v3043_v40, %v3043_v40  ;;  %v1150_v61 = vadd.f32 %v1074_v29, %v1073_v59 }
 0x26a   : > { %v3060_v17 = vsub.f32 %v2741_v16, %v981_v58  ;;  %v3063_v45 = vsub.f32 %v2746_v1, %v981_v58  ;;  %v3070_v32 = vsub.f32 %v2759_v19, %v966_v10  ;;  %v3073_v7 = vsub.f32 %v2763_v57, %v966_v10 }
 0x26b   : > { %v949_v3 = vpop.xlane.xlu1 %948  ;;  %v1153_v44 = vadd.f32 %v1076_v26, %v1075_v63  ;;  %v1198_v33 = vadd.f32 %v1106_v14, %v1105_v30 }
 0x26c   : > { %3550 = vst [vmem:[#allocation28_spill] sm:$0xff] %v3070_v32  ;;  %3551 = vst [vmem:[#allocation26_spill] sm:$0xff] %v3073_v7  ;;  %v982_v16 = vmul.f32 0.00390625, %v949_v3  ;;  %v1107_v1 = vmul.f32 %v3060_v17, %v3060_v17  ;;  %v1108_v58 = vmul.f32 %v3063_v45, %v3063_v45  ;;  %v1077_v59 = vmul.f32 %v3070_v32, %v3070_v32 }
 0x26d   : > { %1151 = vadd.xlane.f32.xlu1 %v1150_v61  ;;  %1154 = vadd.xlane.f32.xlu0 %v1153_v44  ;;  %v1078_v29 = vmul.f32 %v3073_v7, %v3073_v7 }
 0x26e   : > { %v1201_v21 = vadd.f32 %v1108_v58, %v1107_v1  ;;  %v3080_v19 = vsub.f32 %v2765_v36, %v982_v16  ;;  %v3083_v57 = vsub.f32 %v2767_v37, %v982_v16 }
 0x26f   : > { %v1156_v10 = vadd.f32 %v1078_v29, %v1077_v59 }
 0x270   : > { %3552 = vst [vmem:[#allocation29_spill] sm:$0xff] %v3080_v19  ;;  %3553 = vst [vmem:[#allocation30_spill] sm:$0xff] %v3083_v57  ;;  %v1109_v63 = vmul.f32 %v3080_v19, %v3080_v19  ;;  %v1110_v26 = vmul.f32 %v3083_v57, %v3083_v57 }
 0x271   : > { %1199 = vadd.xlane.f32.xlu1 %v1198_v33  ;;  %1202 = vadd.xlane.f32.xlu0 %v1201_v21  ;;  %v1367_v21 = vld [vmem:[%s3428_s4] sm:$0x3] }
 0x272   : > { %v1204_v36 = vadd.f32 %v1110_v26, %v1109_v63  ;;  %v1443_v26 = vld [vmem:[%s3429_s5] sm:$0x3] }
 0x275   : > { %1157 = vadd.xlane.f32.xlu1 %v1156_v10 }
 0x279   : > { %1205 = vadd.xlane.f32.xlu1 %v1204_v36 }
 0x2c1   : > { %v1113_v37 = vpop.xlane.xlu0 %1112 }
 0x2c2   : > { %v1207_v30 = vmul.f32 0.00390625, %v1113_v37 }
 0x2c4   : > { %v1239_v14 = vadd.f32 1e-12, %v1207_v30  ;;  %v3554_v30 = vld [vmem:[#allocation16_spill] sm:$0xff] }
 0x2c6   : > { %v1161_v3 = vpop.xlane.xlu0 %1160  ;;  %1894 = vrsqrt.f32 %v1239_v14  ;;  %v3100_v14 = vrot.slane %v1367_v21, %v3554_v30 }
 0x2c7   : > { %v1223_v61 = vmul.f32 0.00390625, %v1161_v3  ;;  %v3555_v3 = vld [vmem:[#allocation17_spill] sm:$0xff] }
 0x2c9   : > { %v1255_v44 = vadd.f32 1e-12, %v1223_v61  ;;  %v3103_v61 = vrot.slane %v1367_v21, %v3555_v3 }
 0x2ca   : > { %v1116_v16 = vpop.xlane.xlu1 %1115  ;;  %v1119_v1 = vpop.xlane.xlu0 %1118 }
 0x2cb   : > { %1896 = vrsqrt.f32 %v1255_v44  ;;  %v1208_v58 = vmul.f32 0.00390625, %v1116_v16  ;;  %v1209_v33 = vmul.f32 0.00390625, %v1119_v1 }
 0x2cd   : > { %v1240_v59 = vadd.f32 1e-12, %v1208_v58  ;;  %v1241_v29 = vadd.f32 1e-12, %v1209_v33  ;;  %v3106_v58 = vrot.slane %v1443_v26, %v3554_v30  ;;  %v3109_v33 = vrot.slane %v1443_v26, %v3555_v3  ;;  %v3556_v3 = vld [vmem:[#allocation33_spill] sm:$0xff] }
 0x2ce   : > { %v1164_v10 = vpop.xlane.xlu1 %1163  ;;  %v1167_v63 = vpop.xlane.xlu0 %1166 }
 0x2cf   : > { %1898 = vrsqrt.f32 %v1240_v59  ;;  %v1224_v36 = vmul.f32 0.00390625, %v1164_v10  ;;  %v1225_v37 = vmul.f32 0.00390625, %v1167_v63 }
 0x2d0   : > { %1900 = vrsqrt.f32 %v1241_v29  ;;  %v1895_v44 = vpop.eup %1894 }
 0x2d1   : > { %v1256_v16 = vadd.f32 1e-12, %v1224_v36  ;;  %v1257_v1 = vadd.f32 1e-12, %v1225_v37  ;;  %v1303_v59 = vmul.f32 %v1895_v44, %v2774_v43  ;;  %v1304_v10 = vmul.f32 %v1895_v44, %v2777_v34 }
 0x2d2   : > { %v1122_v63 = vpop.xlane.xlu1 %1121  ;;  %v1125_v57 = vpop.xlane.xlu0 %1124 }
 0x2d3   : > { %1902 = vrsqrt.f32 %v1256_v16  ;;  %v1210_v19 = vmul.f32 0.00390625, %v1122_v63  ;;  %v1211_v21 = vmul.f32 0.00390625, %v1125_v57  ;;  %v1379_v29 = vmul.f32 %v3100_v14, %v1303_v59 }
 0x2d4   : > { %v1380_v36 = vmul.f32 %v3103_v61, %v1304_v10  ;;  %1904 = vrsqrt.f32 %v1257_v1 }
 0x2d5   : > { %v1897_v37 = vpop.eup %1896  ;;  %v1242_v30 = vadd.f32 1e-12, %v1210_v19  ;;  %v1243_v7 = vadd.f32 1e-12, %v1211_v21  ;;  %v1455_v26 = vadd.f32 %v3106_v58, %v1379_v29 }
 0x2d6   : > { %v1456_v43 = vadd.f32 %v3109_v33, %v1380_v36  ;;  %v1335_v34 = vmul.f32 %v1897_v37, %v2784_v15  ;;  %v1336_v44 = vmul.f32 %v1897_v37, %v3556_v3  ;;  %v1170_v16 = vpop.xlane.xlu1 %1169  ;;  %v1173_v63 = vpop.xlane.xlu0 %1172  ;;  %v3557_v3 = vld [vmem:[#allocation35_spill] sm:$0xff] }
 0x2d7   : > { %1906 = vrsqrt.f32 %v1242_v30  ;;  %v1226_v57 = vmul.f32 0.00390625, %v1170_v16  ;;  %v1227_v32 = vmul.f32 0.00390625, %v1173_v63  ;;  %1519 = vst [vmem:[%s3120_s26] sm:$0xff] %v1455_v26 }
 0x2d8   : > { %1520 = vst [vmem:[%s3120_s26 + $0x8] sm:$0xff] %v1456_v43  ;;  %v1411_v19 = vmul.f32 %v3100_v14, %v1335_v34  ;;  %v1412_v1 = vmul.f32 %v3103_v61, %v1336_v44  ;;  %1908 = vrsqrt.f32 %v1243_v7 }
 0x2d9   : > { %v1899_v15 = vpop.eup %1898  ;;  %v1258_v59 = vadd.f32 1e-12, %v1226_v57  ;;  %v1259_v10 = vadd.f32 1e-12, %v1227_v32 }
 0x2da   : > { %v1901_v21 = vpop.eup %1900  ;;  %v1487_v29 = vadd.f32 %v3106_v58, %v1411_v19  ;;  %v1488_v36 = vadd.f32 %v3109_v33, %v1412_v1  ;;  %v1305_v37 = vmul.f32 %v1899_v15, %v2806_v13  ;;  %v1306_v30 = vmul.f32 %v1899_v15, %v2809_v12  ;;  %v1128_v26 = vpop.xlane.xlu1 %1127 }
 0x2db   : > { %v1131_v43 = vpop.xlane.xlu0 %1130  ;;  %v1307_v34 = vmul.f32 %v1901_v21, %v2800_v53  ;;  %v1308_v44 = vmul.f32 %v1901_v21, %v3557_v3  ;;  %1910 = vrsqrt.f32 %v1258_v59  ;;  %v1212_v7 = vmul.f32 0.00390625, %v1128_v26  ;;  %v3558_v59 = vld [vmem:[#allocation34_spill] sm:$0xff] }
 0x2dc   : > { %1551 = vst [vmem:[%s3120_s26 + $0x100] sm:$0xff] %v1487_v29  ;;  %1552 = vst [vmem:[%s3120_s26 + $0x108] sm:$0xff] %v1488_v36  ;;  %v1381_v32 = vmul.f32 %v3100_v14, %v1305_v37  ;;  %v1382_v16 = vmul.f32 %v3103_v61, %v1306_v30  ;;  %1912 = vrsqrt.f32 %v1259_v10  ;;  %v1213_v63 = vmul.f32 0.00390625, %v1131_v43 }
 0x2dd   : > { %v1903_v13 = vpop.eup %1902  ;;  %v1383_v12 = vmul.f32 %v3100_v14, %v1307_v34  ;;  %v1384_v57 = vmul.f32 %v3103_v61, %v1308_v44  ;;  %v1244_v53 = vadd.f32 1e-12, %v1212_v7 }
 0x2de   : > { %v1905_v19 = vpop.eup %1904  ;;  %v1457_v1 = vadd.f32 %v3106_v58, %v1381_v32  ;;  %v1458_v15 = vadd.f32 %v3109_v33, %v1382_v16  ;;  %v1337_v21 = vmul.f32 %v1903_v13, %v3558_v59  ;;  %v1338_v10 = vmul.f32 %v1903_v13, %v2797_v52  ;;  %v1176_v29 = vpop.xlane.xlu1 %1175 }
 0x2df   : > { %v1179_v36 = vpop.xlane.xlu0 %1178  ;;  %v1459_v37 = vadd.f32 %v3106_v58, %v1383_v12  ;;  %v1460_v30 = vadd.f32 %v3109_v33, %v1384_v57  ;;  %v1339_v26 = vmul.f32 %v1905_v19, %v2825_v56  ;;  %v1340_v43 = vmul.f32 %v1905_v19, %v2828_v39 }
 0x2e0   : > { %1521 = vst [vmem:[%s3120_s26 + $0x10] sm:$0xff] %v1457_v1  ;;  %1522 = vst [vmem:[%s3120_s26 + $0x18] sm:$0xff] %v1458_v15  ;;  %v1413_v34 = vmul.f32 %v3100_v14, %v1337_v21  ;;  %v1414_v3 = vmul.f32 %v3103_v61, %v1338_v10  ;;  %1914 = vrsqrt.f32 %v1244_v53  ;;  %v1245_v44 = vadd.f32 1e-12, %v1213_v63 }
 0x2e1   : > { %v1907_v7 = vpop.eup %1906  ;;  %1523 = vst [vmem:[%s3120_s26 + $0x20] sm:$0xff] %v1459_v37  ;;  %1524 = vst [vmem:[%s3120_s26 + $0x28] sm:$0xff] %v1460_v30  ;;  %v1415_v52 = vmul.f32 %v3100_v14, %v1339_v26  ;;  %v1416_v32 = vmul.f32 %v3103_v61, %v1340_v43  ;;  %v1228_v56 = vmul.f32 0.00390625, %v1176_v29  ;;  %v1229_v16 = vmul.f32 0.00390625, %v1179_v36 }
 0x2e2   : > { %v1909_v39 = vpop.eup %1908  ;;  %v1489_v13 = vadd.f32 %v3106_v58, %v1413_v34  ;;  %v1490_v12 = vadd.f32 %v3109_v33, %v1414_v3  ;;  %v1309_v57 = vmul.f32 %v1907_v7, %v2822_v54  ;;  %v1310_v63 = vmul.f32 %v1907_v7, %v2833_v55  ;;  %v1134_v53 = vpop.xlane.xlu1 %1133 }
 0x2e3   : > { %v1137_v19 = vpop.xlane.xlu0 %1136  ;;  %v1491_v1 = vadd.f32 %v3106_v58, %v1415_v52  ;;  %v1492_v15 = vadd.f32 %v3109_v33, %v1416_v32  ;;  %v1311_v59 = vmul.f32 %v1909_v39, %v2840_v27  ;;  %v1312_v21 = vmul.f32 %v1909_v39, %v2843_v46 }
 0x2e4   : > { %1553 = vst [vmem:[%s3120_s26 + $0x110] sm:$0xff] %v1489_v13  ;;  %1554 = vst [vmem:[%s3120_s26 + $0x118] sm:$0xff] %v1490_v12  ;;  %v1385_v10 = vmul.f32 %v3100_v14, %v1309_v57  ;;  %v1386_v29 = vmul.f32 %v3103_v61, %v1310_v63  ;;  %1916 = vrsqrt.f32 %v1245_v44  ;;  %v1260_v54 = vadd.f32 1e-12, %v1228_v56 }
 0x2e5   : > { %v1911_v36 = vpop.eup %1910  ;;  %1555 = vst [vmem:[%s3120_s26 + $0x120] sm:$0xff] %v1491_v1  ;;  %1556 = vst [vmem:[%s3120_s26 + $0x128] sm:$0xff] %v1492_v15  ;;  %v1387_v55 = vmul.f32 %v3100_v14, %v1311_v59  ;;  %v1388_v37 = vmul.f32 %v3103_v61, %v1312_v21  ;;  %v1261_v27 = vadd.f32 1e-12, %v1229_v16  ;;  %v1214_v30 = vmul.f32 0.00390625, %v1134_v53 }
 0x2e6   : > { %v1913_v46 = vpop.eup %1912  ;;  %v1461_v26 = vadd.f32 %v3106_v58, %v1385_v10  ;;  %v1462_v43 = vadd.f32 %v3109_v33, %v1386_v29  ;;  %v1341_v34 = vmul.f32 %v1911_v36, %v2848_v11  ;;  %v1342_v3 = vmul.f32 %v1911_v36, %v2851_v22  ;;  %v1182_v44 = vpop.xlane.xlu1 %1181 }
 0x2e7   : > { %v1185_v7 = vpop.xlane.xlu0 %1184  ;;  %v1463_v52 = vadd.f32 %v3106_v58, %v1387_v55  ;;  %v1464_v32 = vadd.f32 %v3109_v33, %v1388_v37  ;;  %v1343_v56 = vmul.f32 %v1913_v46, %v2866_v48  ;;  %v1344_v16 = vmul.f32 %v1913_v46, %v2869_v6 }
 0x2e8   : > { %1525 = vst [vmem:[%s3120_s26 + $0x30] sm:$0xff] %v1461_v26  ;;  %1526 = vst [vmem:[%s3120_s26 + $0x38] sm:$0xff] %v1462_v43  ;;  %v1417_v39 = vmul.f32 %v3100_v14, %v1341_v34  ;;  %v1418_v13 = vmul.f32 %v3103_v61, %v1342_v3  ;;  %1918 = vrsqrt.f32 %v1260_v54  ;;  %v1246_v11 = vadd.f32 1e-12, %v1214_v30 }
 0x2e9   : > { %1527 = vst [vmem:[%s3120_s26 + $0x40] sm:$0xff] %v1463_v52  ;;  %1528 = vst [vmem:[%s3120_s26 + $0x48] sm:$0xff] %v1464_v32  ;;  %v1419_v22 = vmul.f32 %v3100_v14, %v1343_v56  ;;  %v1420_v12 = vmul.f32 %v3103_v61, %v1344_v16  ;;  %1920 = vrsqrt.f32 %v1261_v27  ;;  %v1215_v48 = vmul.f32 0.00390625, %v1137_v19 }
 0x2ea   : > { %v1915_v57 = vpop.eup %1914  ;;  %v1493_v6 = vadd.f32 %v3106_v58, %v1417_v39  ;;  %v1494_v63 = vadd.f32 %v3109_v33, %v1418_v13  ;;  %1922 = vrsqrt.f32 %v1246_v11  ;;  %v1230_v53 = vmul.f32 0.00390625, %v1182_v44  ;;  %v1140_v1 = vpop.xlane.xlu1 %1139 }
 0x2eb   : > { %v1143_v15 = vpop.xlane.xlu0 %1142  ;;  %v1495_v59 = vadd.f32 %v3106_v58, %v1419_v22  ;;  %v1496_v21 = vadd.f32 %v3109_v33, %v1420_v12  ;;  %v1313_v10 = vmul.f32 %v1915_v57, %v2860_v49  ;;  %v1314_v29 = vmul.f32 %v1915_v57, %v2863_v50 }
 0x2ec   : > { %1557 = vst [vmem:[%s3120_s26 + $0x130] sm:$0xff] %v1493_v6  ;;  %1558 = vst [vmem:[%s3120_s26 + $0x138] sm:$0xff] %v1494_v63  ;;  %v1247_v19 = vadd.f32 1e-12, %v1215_v48  ;;  %v1262_v54 = vadd.f32 1e-12, %v1230_v53 }
 0x2ed   : > { %v1231_v36 = vmul.f32 0.00390625, %v1185_v7  ;;  %v1216_v55 = vmul.f32 0.00390625, %v1140_v1  ;;  %1559 = vst [vmem:[%s3120_s26 + $0x140] sm:$0xff] %v1495_v59  ;;  %1560 = vst [vmem:[%s3120_s26 + $0x148] sm:$0xff] %v1496_v21  ;;  %v1389_v37 = vmul.f32 %v3100_v14, %v1313_v10  ;;  %v1390_v27 = vmul.f32 %v3103_v61, %v1314_v29 }
 0x2ee   : > { %v1217_v30 = vmul.f32 0.00390625, %v1143_v15  ;;  %v1917_v46 = vpop.eup %1916  ;;  %1924 = vrsqrt.f32 %v1247_v19  ;;  %v1188_v50 = vpop.xlane.xlu1 %1187 }
 0x2ef   : > { %v1263_v49 = vadd.f32 1e-12, %v1231_v36  ;;  %v1248_v26 = vadd.f32 1e-12, %v1216_v55  ;;  %v1191_v43 = vpop.xlane.xlu0 %1190  ;;  %v1465_v34 = vadd.f32 %v3106_v58, %v1389_v37  ;;  %v1466_v3 = vadd.f32 %v3109_v33, %v1390_v27 }
 0x2f0   : > { %v1315_v44 = vmul.f32 %v1917_v46, %v2885_v41  ;;  %v1316_v7 = vmul.f32 %v1917_v46, %v2888_v2  ;;  %1926 = vrsqrt.f32 %v1262_v54  ;;  %v1249_v52 = vadd.f32 1e-12, %v1217_v30 }
 0x2f1   : > { %v1232_v32 = vmul.f32 0.00390625, %v1188_v50  ;;  %v1233_v56 = vmul.f32 0.00390625, %v1191_v43  ;;  %1529 = vst [vmem:[%s3120_s26 + $0x50] sm:$0xff] %v1465_v34  ;;  %1530 = vst [vmem:[%s3120_s26 + $0x58] sm:$0xff] %v1466_v3  ;;  %1928 = vrsqrt.f32 %v1263_v49 }
 0x2f2   : > { %v1391_v16 = vmul.f32 %v3100_v14, %v1315_v44  ;;  %v1392_v39 = vmul.f32 %v3103_v61, %v1316_v7  ;;  %v1919_v13 = vpop.eup %1918  ;;  %1930 = vrsqrt.f32 %v1248_v26  ;;  %v1146_v41 = vpop.xlane.xlu1 %1145 }
 0x2f3   : > { %v1264_v11 = vadd.f32 1e-12, %v1232_v32  ;;  %v1265_v22 = vadd.f32 1e-12, %v1233_v56  ;;  %v1149_v12 = vpop.xlane.xlu0 %1148  ;;  %v1921_v2 = vpop.eup %1920  ;;  %v1345_v6 = vmul.f32 %v1919_v13, %v2882_v47  ;;  %v1346_v63 = vmul.f32 %v1919_v13, %v2893_v51  ;;  %v3559_v13 = vld [vmem:[#allocation37_spill] sm:$0xff] }
 0x2f4   : > { %v1467_v48 = vadd.f32 %v3106_v58, %v1391_v16  ;;  %v1468_v57 = vadd.f32 %v3109_v33, %v1392_v39  ;;  %v1923_v53 = vpop.eup %1922  ;;  %v1347_v1 = vmul.f32 %v1921_v2, %v2900_v60  ;;  %v1348_v15 = vmul.f32 %v1921_v2, %v2903_v35 }
 0x2f5   : > { %1932 = vrsqrt.f32 %v1249_v52  ;;  %v1218_v59 = vmul.f32 0.00390625, %v1146_v41  ;;  %v1421_v21 = vmul.f32 %v3100_v14, %v1345_v6  ;;  %v1422_v10 = vmul.f32 %v3103_v61, %v1346_v63 }
 0x2f6   : > { %1531 = vst [vmem:[%s3120_s26 + $0x60] sm:$0xff] %v1467_v48  ;;  %1532 = vst [vmem:[%s3120_s26 + $0x68] sm:$0xff] %v1468_v57  ;;  %v1317_v29 = vmul.f32 %v1923_v53, %v2908_v28  ;;  %v1318_v19 = vmul.f32 %v1923_v53, %v2911_v5  ;;  %v1423_v47 = vmul.f32 %v3100_v14, %v1347_v1  ;;  %1934 = vrsqrt.f32 %v1264_v11  ;;  %v1194_v35 = vpop.xlane.xlu1 %1193  ;;  %v3561_v53 = vld [vmem:[#allocation36_spill] sm:$0xff] }
 0x2f7   : > { %v1424_v51 = vmul.f32 %v3103_v61, %v1348_v15  ;;  %v1250_v60 = vadd.f32 1e-12, %v1218_v59  ;;  %v1497_v54 = vadd.f32 %v3106_v58, %v1421_v21  ;;  %v1498_v36 = vadd.f32 %v3109_v33, %v1422_v10  ;;  %v1197_v5 = vpop.xlane.xlu0 %1196  ;;  %v3562_v15 = vld [vmem:[#allocation39_spill] sm:$0xff] }
 0x2f8   : > { %v1393_v55 = vmul.f32 %v3100_v14, %v1317_v29  ;;  %v1394_v28 = vmul.f32 %v3103_v61, %v1318_v19  ;;  %v1925_v37 = vpop.eup %1924  ;;  %v1499_v27 = vadd.f32 %v3106_v58, %v1423_v47  ;;  %1936 = vrsqrt.f32 %v1265_v22  ;;  %v3560_v22 = vld [vmem:[#allocation38_spill] sm:$0xff]  ;;  %v3563_v19 = vld [vmem:[#allocation40_spill] sm:$0xff] }
 0x2f9   : > { %v1500_v30 = vadd.f32 %v3109_v33, %v1424_v51  ;;  %v1219_v46 = vmul.f32 0.00390625, %v1149_v12  ;;  %1561 = vst [vmem:[%s3120_s26 + $0x150] sm:$0xff] %v1497_v54  ;;  %1562 = vst [vmem:[%s3120_s26 + $0x158] sm:$0xff] %v1498_v36  ;;  %v1319_v50 = vmul.f32 %v1925_v37, %v2926_v8  ;;  %v1320_v43 = vmul.f32 %v1925_v37, %v2929_v4  ;;  %v3564_v51 = vld [vmem:[#allocation21_spill] sm:$0xff] }
 0x2fa   : > { %v1469_v49 = vadd.f32 %v3106_v58, %v1393_v55  ;;  %v1470_v26 = vadd.f32 %v3109_v33, %v1394_v28  ;;  %v1927_v34 = vpop.eup %1926  ;;  %1563 = vst [vmem:[%s3120_s26 + $0x160] sm:$0xff] %v1499_v27  ;;  %1938 = vrsqrt.f32 %v1250_v60  ;;  %v1234_v44 = vmul.f32 0.00390625, %v1194_v35  ;;  %v1152_v52 = vpop.xlane.xlu1 %1151  ;;  %v3565_v27 = vld [vmem:[#allocation18_spill] sm:$0xff] }
 0x2fb   : > { %1564 = vst [vmem:[%s3120_s26 + $0x168] sm:$0xff] %v1500_v30  ;;  %v1251_v3 = vadd.f32 1e-12, %v1219_v46  ;;  %v1235_v7 = vmul.f32 0.00390625, %v1197_v5  ;;  %v1929_v32 = vpop.eup %1928  ;;  %v1395_v56 = vmul.f32 %v3100_v14, %v1319_v50  ;;  %v1396_v16 = vmul.f32 %v3103_v61, %v1320_v43  ;;  %v3566_v46 = vld [vmem:[#allocation19_spill] sm:$0xff] }
 0x2fc   : > { %1533 = vst [vmem:[%s3120_s26 + $0x70] sm:$0xff] %v1469_v49  ;;  %1534 = vst [vmem:[%s3120_s26 + $0x78] sm:$0xff] %v1470_v26  ;;  %v1349_v39 = vmul.f32 %v1927_v34, %v2920_v20  ;;  %v1350_v8 = vmul.f32 %v1927_v34, %v2923_v25  ;;  %v1931_v4 = vpop.eup %1930  ;;  %v1351_v11 = vmul.f32 %v1929_v32, %v3559_v13  ;;  %v1266_v12 = vadd.f32 1e-12, %v1234_v44  ;;  %v1155_v26 = vpop.xlane.xlu0 %1154 }
 0x2fd   : > { %v1352_v41 = vmul.f32 %v1929_v32, %v3560_v22  ;;  %1940 = vrsqrt.f32 %v1251_v3  ;;  %v1471_v2 = vadd.f32 %v3106_v58, %v1395_v56  ;;  %v1472_v48 = vadd.f32 %v3109_v33, %v1396_v16 }
 0x2fe   : > { %v1425_v57 = vmul.f32 %v3100_v14, %v1349_v39  ;;  %v1426_v6 = vmul.f32 %v3103_v61, %v1350_v8  ;;  %v1427_v25 = vmul.f32 %v3100_v14, %v1351_v11  ;;  %v1321_v1 = vmul.f32 %v1931_v4, %v3561_v53  ;;  %v3250_v21 = vpop.xlane.xlu1 %1199  ;;  %v3568_v11 = vld [vmem:[#allocation20_spill] sm:$0xff] }
 0x2ff   : > { %v1933_v20 = vpop.eup %1932  ;;  %v1428_v63 = vmul.f32 %v3103_v61, %v1352_v41  ;;  %v1322_v59 = vmul.f32 %v1931_v4, %v3562_v15  ;;  %1535 = vst [vmem:[%s3120_s26 + $0x80] sm:$0xff] %v1471_v2  ;;  %1536 = vst [vmem:[%s3120_s26 + $0x88] sm:$0xff] %v1472_v48  ;;  %1942 = vrsqrt.f32 %v1266_v12  ;;  %v1267_v3 = vadd.f32 1e-12, %v1235_v7  ;;  %v3567_v4 = vld [vmem:[#allocation24_spill] sm:$0xff]  ;;  %v3569_v2 = vld [vmem:[#allocation23_spill] sm:$0xff] }
 0x300   : > { %v1501_v10 = vadd.f32 %v3106_v58, %v1425_v57  ;;  %v1502_v29 = vadd.f32 %v3109_v33, %v1426_v6  ;;  %v1323_v47 = vmul.f32 %v1933_v20, %v3563_v19  ;;  %v1324_v60 = vmul.f32 %v1933_v20, %v3564_v51  ;;  %v1935_v35 = vpop.eup %1934  ;;  %v3570_v15 = vld [vmem:[#allocation22_spill] sm:$0xff] }
 0x301   : > { %v1503_v54 = vadd.f32 %v3106_v58, %v1427_v25  ;;  %v1504_v36 = vadd.f32 %v3109_v33, %v1428_v63  ;;  %v1397_v55 = vmul.f32 %v3100_v14, %v1321_v1  ;;  %v1398_v28 = vmul.f32 %v3103_v61, %v1322_v59 }
 0x302   : > { %1565 = vst [vmem:[%s3120_s26 + $0x170] sm:$0xff] %v1501_v10  ;;  %1566 = vst [vmem:[%s3120_s26 + $0x178] sm:$0xff] %v1502_v29  ;;  %v1399_v5 = vmul.f32 %v3100_v14, %v1323_v47  ;;  %v1400_v37 = vmul.f32 %v3103_v61, %v1324_v60  ;;  %v1353_v30 = vmul.f32 %v1935_v35, %v3565_v27  ;;  %v1937_v50 = vpop.eup %1936  ;;  %v1158_v39 = vpop.xlane.xlu1 %1157  ;;  %1944 = vrsqrt.f32 %v1267_v3  ;;  %v3571_v10 = vld [vmem:[#allocation25_spill] sm:$0xff] }
 0x303   : > { %v1354_v49 = vmul.f32 %v1935_v35, %v3566_v46  ;;  %1567 = vst [vmem:[%s3120_s26 + $0x180] sm:$0xff] %v1503_v54  ;;  %1568 = vst [vmem:[%s3120_s26 + $0x188] sm:$0xff] %v1504_v36  ;;  %v1473_v43 = vadd.f32 %v3106_v58, %v1397_v55  ;;  %v1474_v34 = vadd.f32 %v3109_v33, %v1398_v28  ;;  %v1220_v7 = vmul.f32 0.00390625, %v1152_v52 }
 0x304   : > { %v1475_v44 = vadd.f32 %v3106_v58, %v1399_v5  ;;  %v1476_v32 = vadd.f32 %v3109_v33, %v1400_v37  ;;  %v1429_v56 = vmul.f32 %v3100_v14, %v1353_v30  ;;  %v1939_v8 = vpop.eup %1938  ;;  %v1355_v13 = vmul.f32 %v1937_v50, %v3567_v4 }
 0x305   : > { %v1430_v16 = vmul.f32 %v3103_v61, %v1354_v49  ;;  %1537 = vst [vmem:[%s3120_s26 + $0x90] sm:$0xff] %v1473_v43  ;;  %1538 = vst [vmem:[%s3120_s26 + $0x98] sm:$0xff] %v1474_v34  ;;  %v1356_v22 = vmul.f32 %v1937_v50, %v3568_v11  ;;  %v1325_v48 = vmul.f32 %v1939_v8, %v3569_v2  ;;  %v1252_v63 = vadd.f32 1e-12, %v1220_v7 }
 0x306   : > { %1539 = vst [vmem:[%s3120_s26 + $0xa0] sm:$0xff] %v1475_v44  ;;  %1540 = vst [vmem:[%s3120_s26 + $0xa8] sm:$0xff] %v1476_v32  ;;  %v1505_v41 = vadd.f32 %v3106_v58, %v1429_v56  ;;  %v1326_v57 = vmul.f32 %v1939_v8, %v2983_v31  ;;  %v1431_v20 = vmul.f32 %v3100_v14, %v1355_v13  ;;  %v1221_v53 = vmul.f32 0.00390625, %v1155_v26  ;;  %v1203_v31 = vpop.xlane.xlu0 %1202  ;;  %v1206_v55 = vpop.xlane.xlu1 %1205 }
 0x307   : > { %v1506_v12 = vadd.f32 %v3109_v33, %v1430_v16  ;;  %v1941_v6 = vpop.eup %1940  ;;  %v1432_v25 = vmul.f32 %v3103_v61, %v1356_v22  ;;  %v1401_v52 = vmul.f32 %v3100_v14, %v1325_v48  ;;  %1946 = vrsqrt.f32 %v1252_v63  ;;  %v3572_v16 = vld [vmem:[#allocation27_spill] sm:$0xff] }
 0x308   : > { %1569 = vst [vmem:[%s3120_s26 + $0x190] sm:$0xff] %v1505_v41  ;;  %v1402_v1 = vmul.f32 %v3103_v61, %v1326_v57  ;;  %v1327_v59 = vmul.f32 %v1941_v6, %v3570_v15  ;;  %v1328_v29 = vmul.f32 %v1941_v6, %v3571_v10  ;;  %v1507_v19 = vadd.f32 %v3106_v58, %v1431_v20 }
 0x309   : > { %1570 = vst [vmem:[%s3120_s26 + $0x198] sm:$0xff] %v1506_v12  ;;  %v1508_v47 = vadd.f32 %v3109_v33, %v1432_v25  ;;  %v1253_v51 = vadd.f32 1e-12, %v1221_v53  ;;  %v1477_v60 = vadd.f32 %v3106_v58, %v1401_v52  ;;  %v1236_v28 = vmul.f32 0.00390625, %v3250_v21  ;;  %v1943_v46 = vpop.eup %1942 }
 0x30a   : > { %v1478_v35 = vadd.f32 %v3109_v33, %v1402_v1  ;;  %v1403_v54 = vmul.f32 %v3100_v14, %v1327_v59  ;;  %v1404_v36 = vmul.f32 %v3103_v61, %v1328_v29  ;;  %1571 = vst [vmem:[%s3120_s26 + $0x1a0] sm:$0xff] %v1507_v19  ;;  %v1237_v5 = vmul.f32 0.00390625, %v1203_v31 }
 0x30b   : > { %1572 = vst [vmem:[%s3120_s26 + $0x1a8] sm:$0xff] %v1508_v47  ;;  %1948 = vrsqrt.f32 %v1253_v51  ;;  %v1222_v37 = vmul.f32 0.00390625, %v1158_v39  ;;  %1541 = vst [vmem:[%s3120_s26 + $0xb0] sm:$0xff] %v1477_v60  ;;  %v1268_v49 = vadd.f32 1e-12, %v1236_v28  ;;  %v1238_v50 = vmul.f32 0.00390625, %v1206_v55 }
 0x30c   : > { %1542 = vst [vmem:[%s3120_s26 + $0xb8] sm:$0xff] %v1478_v35  ;;  %v1479_v27 = vadd.f32 %v3106_v58, %v1403_v54  ;;  %v1480_v30 = vadd.f32 %v3109_v33, %v1404_v36  ;;  %v1269_v26 = vadd.f32 1e-12, %v1237_v5  ;;  %v1357_v43 = vmul.f32 %v1943_v46, %v3002_v18  ;;  %v1945_v21 = vpop.eup %1944  ;;  %v3573_v60 = vld [vmem:[#allocation28_spill] sm:$0xff]  ;;  %v3574_v54 = vld [vmem:[#allocation26_spill] sm:$0xff]  ;;  %v3575_v55 = vld [vmem:[#allocation29_spill] sm:$0xff] }
 0x30d   : > { %v1358_v34 = vmul.f32 %v1943_v46, %v3013_v62  ;;  %1950 = vrsqrt.f32 %v1268_v49  ;;  %v1254_v3 = vadd.f32 1e-12, %v1222_v37  ;;  %v1359_v56 = vmul.f32 %v1945_v21, %v3020_v42  ;;  %v3576_v5 = vld [vmem:[#allocation30_spill] sm:$0xff] }
 0x30e   : > { %1543 = vst [vmem:[%s3120_s26 + $0xc0] sm:$0xff] %v1479_v27  ;;  %1544 = vst [vmem:[%s3120_s26 + $0xc8] sm:$0xff] %v1480_v30  ;;  %v1433_v44 = vmul.f32 %v3100_v14, %v1357_v43  ;;  %v1360_v39 = vmul.f32 %v1945_v21, %v3572_v16  ;;  %1952 = vrsqrt.f32 %v1269_v26  ;;  %v1270_v8 = vadd.f32 1e-12, %v1238_v50 }
 0x30f   : > { %v1434_v32 = vmul.f32 %v3103_v61, %v1358_v34  ;;  %v1435_v4 = vmul.f32 %v3100_v14, %v1359_v56  ;;  %1954 = vrsqrt.f32 %v1254_v3 }
 0x310   : > { %v1509_v18 = vadd.f32 %v3106_v58, %v1433_v44  ;;  %v1436_v13 = vmul.f32 %v3103_v61, %v1360_v39  ;;  %1956 = vrsqrt.f32 %v1270_v8 }
 0x311   : > { %v1510_v62 = vadd.f32 %v3109_v33, %v1434_v32  ;;  %v1947_v11 = vpop.eup %1946  ;;  %v1511_v42 = vadd.f32 %v3106_v58, %v1435_v4 }
 0x312   : > { %1573 = vst [vmem:[%s3120_s26 + $0x1b0] sm:$0xff] %v1509_v18  ;;  %v1512_v22 = vadd.f32 %v3109_v33, %v1436_v13  ;;  %v1329_v7 = vmul.f32 %v1947_v11, %v3028_v23  ;;  %v1330_v41 = vmul.f32 %v1947_v11, %v3031_v9 }
 0x313   : > { %1574 = vst [vmem:[%s3120_s26 + $0x1b8] sm:$0xff] %v1510_v62  ;;  %1575 = vst [vmem:[%s3120_s26 + $0x1c0] sm:$0xff] %v1511_v42 }
 0x314   : > { %1576 = vst [vmem:[%s3120_s26 + $0x1c8] sm:$0xff] %v1512_v22  ;;  %v1405_v2 = vmul.f32 %v3100_v14, %v1329_v7  ;;  %v1406_v48 = vmul.f32 %v3103_v61, %v1330_v41 }
 0x315   : > { %v1949_v12 = vpop.eup %1948 }
 0x316   : > { %v1331_v57 = vmul.f32 %v1949_v12, %v3046_v24  ;;  %v1332_v6 = vmul.f32 %v1949_v12, %v3049_v0  ;;  %v1481_v20 = vadd.f32 %v3106_v58, %v1405_v2  ;;  %v1482_v23 = vadd.f32 %v3109_v33, %v1406_v48 }
 0x317   : > { %v1951_v63 = vpop.eup %1950 }
 0x318   : > { %v1407_v9 = vmul.f32 %v3100_v14, %v1331_v57  ;;  %v1408_v25 = vmul.f32 %v3103_v61, %v1332_v6  ;;  %1545 = vst [vmem:[%s3120_s26 + $0xd0] sm:$0xff] %v1481_v20  ;;  %1546 = vst [vmem:[%s3120_s26 + $0xd8] sm:$0xff] %v1482_v23  ;;  %v1361_v1 = vmul.f32 %v1951_v63, %v3040_v38  ;;  %v1953_v0 = vpop.eup %1952 }
 0x319   : > { %v1362_v24 = vmul.f32 %v1951_v63, %v3043_v40  ;;  %v1363_v10 = vmul.f32 %v1953_v0, %v3060_v17  ;;  %v1364_v29 = vmul.f32 %v1953_v0, %v3063_v45  ;;  %v1955_v31 = vpop.eup %1954 }
 0x31a   : > { %v1483_v53 = vadd.f32 %v3106_v58, %v1407_v9  ;;  %v1484_v52 = vadd.f32 %v3109_v33, %v1408_v25  ;;  %v1437_v15 = vmul.f32 %v3100_v14, %v1361_v1  ;;  %v1957_v51 = vpop.eup %1956  ;;  %v1333_v35 = vmul.f32 %v1955_v31, %v3573_v60 }
 0x31b   : > { %v1438_v59 = vmul.f32 %v3103_v61, %v1362_v24  ;;  %v1439_v19 = vmul.f32 %v3100_v14, %v1363_v10  ;;  %v1440_v47 = vmul.f32 %v3103_v61, %v1364_v29  ;;  %v1334_v17 = vmul.f32 %v1955_v31, %v3574_v54 }
 0x31c   : > { %1547 = vst [vmem:[%s3120_s26 + $0xe0] sm:$0xff] %v1483_v53  ;;  %1548 = vst [vmem:[%s3120_s26 + $0xe8] sm:$0xff] %v1484_v52  ;;  %v1513_v38 = vadd.f32 %v3106_v58, %v1437_v15  ;;  %v1365_v28 = vmul.f32 %v1957_v51, %v3575_v55  ;;  %v1366_v37 = vmul.f32 %v1957_v51, %v3576_v5 }
 0x31d   : > { %v1514_v40 = vadd.f32 %v3109_v33, %v1438_v59  ;;  %v1515_v45 = vadd.f32 %v3106_v58, %v1439_v19  ;;  %v1516_v36 = vadd.f32 %v3109_v33, %v1440_v47  ;;  %v1409_v27 = vmul.f32 %v3100_v14, %v1333_v35 }
 0x31e   : > { %1577 = vst [vmem:[%s3120_s26 + $0x1d0] sm:$0xff] %v1513_v38  ;;  %v1410_v30 = vmul.f32 %v3103_v61, %v1334_v17  ;;  %v1441_v46 = vmul.f32 %v3100_v14, %v1365_v28  ;;  %v1442_v49 = vmul.f32 %v3103_v61, %v1366_v37 }
 0x31f   : > { %1578 = vst [vmem:[%s3120_s26 + $0x1d8] sm:$0xff] %v1514_v40  ;;  %1579 = vst [vmem:[%s3120_s26 + $0x1e0] sm:$0xff] %v1515_v45  ;;  %v1485_v26 = vadd.f32 %v3106_v58, %v1409_v27 }
 0x320   : > { %1580 = vst [vmem:[%s3120_s26 + $0x1e8] sm:$0xff] %v1516_v36  ;;  %v1486_v50 = vadd.f32 %v3109_v33, %v1410_v30  ;;  %v1517_v43 = vadd.f32 %v3106_v58, %v1441_v46  ;;  %v1518_v14 = vadd.f32 %v3109_v33, %v1442_v49 }
 0x321   : > { %1549 = vst [vmem:[%s3120_s26 + $0xf0] sm:$0xff] %v1485_v26 }
 0x322   : > { %1550 = vst [vmem:[%s3120_s26 + $0xf8] sm:$0xff] %v1486_v50  ;;  %1581 = vst [vmem:[%s3120_s26 + $0x1f0] sm:$0xff] %v1517_v43 }
 0x323   : > { %1582 = vst [vmem:[%s3120_s26 + $0x1f8] sm:$0xff] %v1518_v14 }
 0x324   : > { %2059 = shalt.err (!%p2056_p6)
}
 0x325   : > { %s2060_s29 = scalar_lea.hbm %s3372_s7, 8192  ;;  %s2064_s27 = scalar_lea.hbm %s3430_s6, 16384 }
 0x326   : > { %p2061_p8 = scmp.ne.s32.totalorder %s3372_s7, %s2060_s29  ;;  %p2065_p4 = scmp.lt.u32.totalorder %s3372_s7, %s3430_s6 }
 0x327   : > { %p2066_p11 = scmp.lt.u32.totalorder %s2064_s27, %s2060_s29  ;;  %p2068_p3 = scmp.lt.u32.totalorder %s2060_s29, %s3372_s7 }
 0x328   : > { %p2062_p10 = pnand %p2061_p8, %p2259_p12 }
 0x329   : > { %p2067_p13 = por %p2066_p11, %p2065_p4 }
 0x32a   : > { %p2063_p0 = pneg %p2062_p10 }
 0x32b   : > { %p2069_p7 = por %p2068_p3, %p2067_p13 }
 0x32d   : > { %p2070_p9 = pnand %p2069_p7, %p2063_p0 }
 0x32f   : > { %2073 = shalt.err (!%p2070_p9)
}
 0x330   : > { %s2128_s12 = smov 256   ;;  %s2129_s10 = smov 16  }
 0x331   : > { %1836 = dma.vmem_to_hbm [thread:$0]  (%p2259_p12), %s3374_s23, 8192, %s3372_s7, %s1584_s11, %s2128_s12, %s2128_s12, %s2129_s10  }
 0x332 PF: > { %s1613_s8 = sand.u32 1, %s2108_s21   ;;  %p3577_p1 = scmp.ne.s32.totalorder %s3485_s28, 0 }
 0x333   : > { %p3578_p5 = scmp.ge.s32.totalorder %s2120_s24, 2  ;;  %s1614_s26 = scalar_lea.sflag [#allocation4], %s1613_s8 }
 0x335   : > { %p1850_p2 = pnand %p3578_p5, %p3577_p1 }
 0x337   : > { %2103 = dma.done.wait (!%p1850_p2), %s1614_s26, 8192  }
 0x338   : > { %2105 = vsyncadd (!%p1850_p2), %s1614_s26, 4294959104  ;;  %s3579_s24 = sld [smem:[#allocation14_spill]]  ;;  %s3580_s15 = sld [smem:[#allocation13_spill]] }
 0x339   : > { %s3581_s23 = sld [smem:[#allocation15_spill]]  ;;  %s3582_s21 = smov %s2112_s22 }
 0x33e   : > { %p22_p6 = scmp.ge.s32.totalorder %s3579_s24, 4   ;;  %s3583_s22 = smov %s3580_s15 }
 0x340   :  { %24 = sbr.rel (!%p22_p6) target bundleno = 10 (0xa), region = 106 }
 0x347   :  { %1619 = vsyncpa [#allocation3], 1 }
 0x348   :  { %1621 = vsyncpa [#allocation3 + $0x1], 1 }
 0x349   :  { %1622 = vsyncpa [#allocation6], 1 }
 0x34a   :  { %1624 = vsyncpa [#allocation6 + $0x1], 1 }
 0x34b   :  { %1625 = vsyncpa [#allocation4], 1 }
 0x34c   :  { %1627 = vsyncpa [#allocation4 + $0x1], 1 }

</bundles_post_ra>
